<compile_context>
chip_gen: v7x
topology: tpu7x:2x2x1
jax: 0.10.0
libtpu: 0.0.40
codegen_flags: <defaults>
</compile_context>

<pallas_src>
from functools import partial

import jax
import jax.numpy as jnp
from jax.experimental import pallas as pl
from jax.experimental.pallas import tpu as pltpu

HP = 128  # lane-aligned per-gate hidden width (each of r|z|n padded to 128 lanes)


def _eqrnn_kernel(x_ref, w_ih_ref, w_hh_ref, b_gi_ref, b_hhn_ref,
                  w1_ref, b1_ref, w2_ref, b2_ref, out_ref, gi_ref):
    TB, _ = x_ref.shape
    B = out_ref.shape[0]                        # sublane-padded batch
    T = TB // B
    HP_ = w_hh_ref.shape[0]                     # lane-padded hidden width (128)

    # (1) Hoisted input projection for ALL timesteps: one (T*B, I) x (I, 3*HP)
    #     MXU matmul into flat VMEM scratch.  b_gi already contains
    #     b_ih (all gates) + b_hh (r, z gates).
    gi_ref[...] = jnp.dot(x_ref[...], w_ih_ref[...],
                          preferred_element_type=jnp.float32) + b_gi_ref[...]

    # (2) Loop-invariant broadcast hoisted once (not CSE'd if left in the loop).
    b_hhn_b = jnp.broadcast_to(b_hhn_ref[...], (B, HP_))

    # (3) Serial GRU recurrence.  w_hh is read per-step from the ref (no
    #     48-vreg weight value live across the unrolled loop); the [r|z] / n
    #     split uses both 256-wide MXUs on v6e/v7x and lets the r/z sigmoids
    #     overlap the n-tile drain.
    # TODO(synk): for maximum per-step latency, keep w_hh resident in the MXU
    # across steps via pltpu.matmul_push_rhs / matmul_acc_lhs / matmul_pop
    # (per-generation tuning; verify from the bundle dump first).
    def step(t, h):
        off = pl.multiple_of(t * B, 8)
        gi = gi_ref[pl.ds(off, B), :]                              # (B, 3*HP)
        gh_rz = jnp.dot(h, w_hh_ref[:, 0:2 * HP_],
                        preferred_element_type=jnp.float32)        # (B, 2*HP)
        gh_n = jnp.dot(h, w_hh_ref[:, 2 * HP_:3 * HP_],
                       preferred_element_type=jnp.float32)         # (B, HP)
        rz = jax.nn.sigmoid(gi[:, 0:2 * HP_] + gh_rz)
        r = rz[:, 0:HP_]
        z = rz[:, HP_:2 * HP_]
        n = jnp.tanh(gi[:, 2 * HP_:3 * HP_] + r * (gh_n + b_hhn_b))
        return (1.0 - z) * n + z * h

    h0 = jnp.zeros((B, HP_), jnp.float32)
    h_T = jax.lax.fori_loop(0, T, step, h0, unroll=True)

    # (4) MLP head: Linear(H,10) -> ReLU -> Linear(10,1); runs once.
    y = jnp.dot(h_T, w1_ref[...], preferred_element_type=jnp.float32) + b1_ref[...]
    y = jnp.maximum(y, 0.0)
    y = jnp.dot(y, w2_ref[...], preferred_element_type=jnp.float32) + b2_ref[...]
    out_ref[...] = y.astype(out_ref.dtype)


def _pad_gates_cols(w, H):
    """(rows, 3H) [r|z|n] -> (rows, 3*HP): each gate padded to HP lanes with zeros."""
    rows = w.shape[0]
    out = jnp.zeros((rows, 3 * HP), jnp.float32)
    for g in range(3):
        out = out.at[:, g * HP:g * HP + H].set(w[:, g * H:(g + 1) * H])
    return out


def prepare_params(params):
    """One-time lane padding + bias folding.  Call once; reuse the result.

    Zero-padded weight/bias columns keep padded hidden lanes exactly 0
    (z_pad=0.5, n_pad=0 -> h_pad stays 0 from h0=0).
    """
    H = params["w_hh"].shape[0]
    w_ih_p = _pad_gates_cols(params["w_ih"], H)                         # (I, 3*HP)
    w_hh_p = jnp.zeros((HP, 3 * HP), jnp.float32)
    w_hh_p = w_hh_p.at[:H, :].set(_pad_gates_cols(params["w_hh"], H))   # (HP, 3*HP)

    b_ih, b_hh = params["b_ih"], params["b_hh"]
    # Fold b_ih (all gates) + b_hh (r,z gates) into the hoisted projection
    # bias; b_hh_n must stay inside r*(...) per torch.nn.GRU semantics.
    b_gi = jnp.concatenate([b_ih[:, 0:H] + b_hh[:, 0:H],
                            b_ih[:, H:2 * H] + b_hh[:, H:2 * H],
                            b_ih[:, 2 * H:3 * H]], axis=1)              # (1, 3H)
    b_gi_p = _pad_gates_cols(b_gi, H)                                   # (1, 3*HP)
    b_hhn_p = jnp.zeros((1, HP), jnp.float32).at[:, :H].set(b_hh[:, 2 * H:3 * H])

    w1_p = (jnp.zeros((HP, params["w1"].shape[1]), jnp.float32)
            .at[:H, :].set(params["w1"]))                               # (HP, 10)

    return {"w_ih_p": w_ih_p, "w_hh_p": w_hh_p, "b_gi_p": b_gi_p,
            "b_hhn_p": b_hhn_p, "w1_p": w1_p,
            "b1": params["b1"], "w2": params["w2"], "b2": params["b2"]}


@jax.jit
def eqrnn_forward(x_btI, pp):
    """x_btI: (B, T, I) float32 (batch_first); pp: prepare_params(params)."""
    B, T, I = x_btI.shape
    B_pad = ((B + 7) // 8) * 8                 # sublane-aligned batch

    # time-major, zero-padded batch, pre-flattened to (T*B_pad, I) so the
    # kernel needs no in-kernel reshapes.
    x = jnp.transpose(x_btI, (1, 0, 2))                       # (T, B, I)
    x = jnp.pad(x, ((0, 0), (0, B_pad - B), (0, 0)))          # (T, B_pad, I)
    x = x.reshape(T * B_pad, I)

    vmem = pl.BlockSpec(memory_space=pltpu.MemorySpace.VMEM)
    out = pl.pallas_call(
        _eqrnn_kernel,
        out_shape=jax.ShapeDtypeStruct((B_pad, 1), jnp.float32),
        in_specs=[vmem] * 9,
        out_specs=vmem,
        scratch_shapes=[pltpu.VMEM((T * B_pad, 3 * HP), jnp.float32)],
    )(x, pp["w_ih_p"], pp["w_hh_p"], pp["b_gi_p"], pp["b_hhn_p"],
      pp["w1_p"], pp["b1"], pp["w2"], pp["b2"])
    # TODO(synk): for very long T (x + gi no longer trivially fit VMEM, esp.
    # v7x's 64 MiB) switch to a time-chunked grid (Tc~64-128, time axis
    # "arbitrary", h carried in scratch, explicit vmem_limit_bytes); for large
    # batched inference on v7x add a leading "parallel" batch grid axis to use
    # both TensorCores.
    return out[:B]


def init_params(key, input_size=12, hidden_size=48):
    """Deterministic synthetic parameters (shapes match nn.GRU + nn.Linear)."""
    ks = jax.random.split(key, 8)
    I, H = input_size, hidden_size
    s = lambda fan_in: 1.0 / jnp.sqrt(fan_in)
    u = lambda k, shape, b: jax.random.uniform(k, shape, jnp.float32, -b, b)
    return {
        # stored pre-transposed for right-multiply, gate order r|z|n
        "w_ih": u(ks[0], (I, 3 * H), s(H)),
        "w_hh": u(ks[1], (H, 3 * H), s(H)),
        "b_ih": u(ks[2], (1, 3 * H), s(H)),
        "b_hh": u(ks[3], (1, 3 * H), s(H)),
        "w1":   u(ks[4], (H, 10), s(H)),
        "b1":   u(ks[5], (1, 10), s(H)),
        "w2":   u(ks[6], (10, 1), s(10)),
        "b2":   u(ks[7], (1, 1), s(10)),
    }


def eqrnn_reference(x_btI, params):
    """Pure-JAX reference implementing torch.nn.GRU semantics."""
    B, T, I = x_btI.shape
    H = params["w_hh"].shape[0]
    h0 = jnp.zeros((B, H), jnp.float32)

    def step(h, x_t):
        gi = x_t @ params["w_ih"] + params["b_ih"]
        gh = h @ params["w_hh"] + params["b_hh"]
        r = jax.nn.sigmoid(gi[:, :H] + gh[:, :H])
        z = jax.nn.sigmoid(gi[:, H:2 * H] + gh[:, H:2 * H])
        n = jnp.tanh(gi[:, 2 * H:] + r * gh[:, 2 * H:])
        h_new = (1.0 - z) * n + z * h
        return h_new, None

    h_T, _ = jax.lax.scan(step, h0, jnp.transpose(x_btI, (1, 0, 2)))
    y = jnp.maximum(h_T @ params["w1"] + params["b1"], 0.0)
    return y @ params["w2"] + params["b2"]


if __name__ == "__main__":
    B, T, I, H = 4, 8, 12, 48
    key = jax.random.PRNGKey(0)
    k_x, k_p = jax.random.split(key)
    x = jax.random.normal(k_x, (B, T, I), jnp.float32)
    params = init_params(k_p, input_size=I, hidden_size=H)

    # One-time parameter padding/folding (hoisted out of the per-call path).
    pp = jax.block_until_ready(prepare_params(params))

    out = jax.block_until_ready(eqrnn_forward(x, pp))

    ref = eqrnn_reference(x, params)
    assert out.shape == (B, 1)
    assert jnp.allclose(out, ref, atol=1e-4, rtol=1e-4), (out, ref)

    print("KERNEL_OK")
</pallas_src>

<mosaic_0001>
module attributes {stable_mosaic.version = 11 : i64} {
  func.func @_eqrnn_kernel(%arg0: memref<64x12xf32, #tpu.memory_space<vmem>>, %arg1: memref<12x384xf32, #tpu.memory_space<vmem>>, %arg2: memref<128x384xf32, #tpu.memory_space<vmem>>, %arg3: memref<1x384xf32, #tpu.memory_space<vmem>>, %arg4: memref<1x128xf32, #tpu.memory_space<vmem>>, %arg5: memref<128x10xf32, #tpu.memory_space<vmem>>, %arg6: memref<1x10xf32, #tpu.memory_space<vmem>>, %arg7: memref<10x1xf32, #tpu.memory_space<vmem>>, %arg8: memref<1x1xf32, #tpu.memory_space<vmem>>, %arg9: memref<8x1xf32, #tpu.memory_space<vmem>>, %arg10: memref<64x384xf32, #tpu.memory_space<vmem>>) attributes {dimension_semantics = [], scalar_prefetch = 0 : i64, scratch_operands = 1 : i64, tpu.core_type = #tpu.core_type<tc>} {
    %c0 = arith.constant 0 : index
    %c0_0 = arith.constant 0 : index
    %0 = vector.load %arg0[%c0, %c0_0] : memref<64x12xf32, #tpu.memory_space<vmem>>, vector<64x12xf32>
    %c0_1 = arith.constant 0 : index
    %c0_2 = arith.constant 0 : index
    %1 = vector.load %arg1[%c0_1, %c0_2] : memref<12x384xf32, #tpu.memory_space<vmem>>, vector<12x384xf32>
    %cst = arith.constant dense<0.000000e+00> : vector<64x384xf32>
    %2 = tpu.matmul %0, %1, %cst {dimension_numbers = #tpu.dot_dimension_numbers<[1], [0], [0], [1], [0, 0, 1, 1], [], []>} : vector<64x12xf32>, vector<12x384xf32>, vector<64x384xf32> -> vector<64x384xf32>
    %c0_3 = arith.constant 0 : index
    %c0_4 = arith.constant 0 : index
    %3 = vector.load %arg3[%c0_3, %c0_4] : memref<1x384xf32, #tpu.memory_space<vmem>>, vector<1x384xf32>
    %4 = vector.broadcast %3 : vector<1x384xf32> to vector<64x384xf32>
    %5 = arith.addf %2, %4 : vector<64x384xf32>
    %c0_5 = arith.constant 0 : index
    %c0_6 = arith.constant 0 : index
    %6 = vector.load %arg10[%c0_5, %c0_6] : memref<64x384xf32, #tpu.memory_space<vmem>>, vector<64x384xf32>
    tpu.vector_store %arg10[%c0_5, %c0_6], %5 {strides = array<i32>} : memref<64x384xf32, #tpu.memory_space<vmem>>, vector<64x384xf32>,
    %c0_7 = arith.constant 0 : index
    %c0_8 = arith.constant 0 : index
    %7 = vector.load %arg4[%c0_7, %c0_8] : memref<1x128xf32, #tpu.memory_space<vmem>>, vector<1x128xf32>
    %8 = vector.shape_cast %7 : vector<1x128xf32> to vector<1x128xf32>
    %9 = vector.broadcast %8 : vector<1x128xf32> to vector<8x128xf32>
    %cst_9 = arith.constant 0.000000e+00 : f32
    %10 = vector.broadcast %cst_9 : f32 to vector<8x128xf32>
    %c0_i32 = arith.constant 0 : i32
    %c8_i32 = arith.constant 8 : i32
    %11 = arith.muli %c0_i32, %c8_i32 : i32
    %12 = tpu.assume_multiple %11, 8 : i32
    %13 = arith.index_cast %12 : i32 to index
    %c0_10 = arith.constant 0 : index
    %14 = vector.load %arg10[%13, %c0_10] : memref<64x384xf32, #tpu.memory_space<vmem>>, vector<8x384xf32>
    %c0_11 = arith.constant 0 : index
    %c0_12 = arith.constant 0 : index
    %15 = vector.load %arg2[%c0_11, %c0_12] : memref<128x384xf32, #tpu.memory_space<vmem>>, vector<128x256xf32>
    %cst_13 = arith.constant dense<0.000000e+00> : vector<8x256xf32>
    %16 = tpu.matmul %10, %15, %cst_13 {dimension_numbers = #tpu.dot_dimension_numbers<[1], [0], [0], [1], [0, 0, 1, 1], [], []>} : vector<8x128xf32>, vector<128x256xf32>, vector<8x256xf32> -> vector<8x256xf32>
    %c0_14 = arith.constant 0 : index
    %c256 = arith.constant 256 : index
    %17 = vector.load %arg2[%c0_14, %c256] : memref<128x384xf32, #tpu.memory_space<vmem>>, vector<128x128xf32>
    %cst_15 = arith.constant dense<0.000000e+00> : vector<8x128xf32>
    %18 = tpu.matmul %10, %17, %cst_15 {dimension_numbers = #tpu.dot_dimension_numbers<[1], [0], [0], [1], [0, 0, 1, 1], [], []>} : vector<8x128xf32>, vector<128x128xf32>, vector<8x128xf32> -> vector<8x128xf32>
    %19 = vector.extract_strided_slice %14 {offsets = [0, 0], sizes = [8, 256], strides = [1, 1]} : vector<8x384xf32> to vector<8x256xf32>
    %20 = arith.addf %19, %16 : vector<8x256xf32>
    %21 = arith.negf %20 : vector<8x256xf32>
    %22 = math.exp %21 : vector<8x256xf32>
    %cst_16 = arith.constant 1.000000e+00 : f32
    %23 = vector.broadcast %cst_16 : f32 to vector<8x256xf32>
    %24 = arith.addf %23, %22 : vector<8x256xf32>
    %25 = arith.divf %23, %24 : vector<8x256xf32>
    %26 = vector.extract_strided_slice %25 {offsets = [0, 0], sizes = [8, 128], strides = [1, 1]} : vector<8x256xf32> to vector<8x128xf32>
    %27 = vector.extract_strided_slice %25 {offsets = [0, 128], sizes = [8, 128], strides = [1, 1]} : vector<8x256xf32> to vector<8x128xf32>
    %28 = vector.extract_strided_slice %14 {offsets = [0, 256], sizes = [8, 128], strides = [1, 1]} : vector<8x384xf32> to vector<8x128xf32>
    %29 = arith.addf %18, %9 : vector<8x128xf32>
    %30 = arith.mulf %26, %29 : vector<8x128xf32>
    %31 = arith.addf %28, %30 : vector<8x128xf32>
    %32 = math.tanh %31 : vector<8x128xf32>
    %cst_17 = arith.constant 1.000000e+00 : f32
    %33 = vector.broadcast %cst_17 : f32 to vector<8x128xf32>
    %34 = arith.subf %33, %27 : vector<8x128xf32>
    %35 = arith.mulf %34, %32 : vector<8x128xf32>
    %36 = arith.mulf %27, %10 : vector<8x128xf32>
    %37 = arith.addf %35, %36 : vector<8x128xf32>
    %c1_i32 = arith.constant 1 : i32
    %c8_i32_18 = arith.constant 8 : i32
    %38 = arith.muli %c1_i32, %c8_i32_18 : i32
    %39 = tpu.assume_multiple %38, 8 : i32
    %40 = arith.index_cast %39 : i32 to index
    %c0_19 = arith.constant 0 : index
    %41 = vector.load %arg10[%40, %c0_19] : memref<64x384xf32, #tpu.memory_space<vmem>>, vector<8x384xf32>
    %c0_20 = arith.constant 0 : index
    %c0_21 = arith.constant 0 : index
    %42 = vector.load %arg2[%c0_20, %c0_21] : memref<128x384xf32, #tpu.memory_space<vmem>>, vector<128x256xf32>
    %cst_22 = arith.constant dense<0.000000e+00> : vector<8x256xf32>
    %43 = tpu.matmul %37, %42, %cst_22 {dimension_numbers = #tpu.dot_dimension_numbers<[1], [0], [0], [1], [0, 0, 1, 1], [], []>} : vector<8x128xf32>, vector<128x256xf32>, vector<8x256xf32> -> vector<8x256xf32>
    %c0_23 = arith.constant 0 : index
    %c256_24 = arith.constant 256 : index
    %44 = vector.load %arg2[%c0_23, %c256_24] : memref<128x384xf32, #tpu.memory_space<vmem>>, vector<128x128xf32>
    %cst_25 = arith.constant dense<0.000000e+00> : vector<8x128xf32>
    %45 = tpu.matmul %37, %44, %cst_25 {dimension_numbers = #tpu.dot_dimension_numbers<[1], [0], [0], [1], [0, 0, 1, 1], [], []>} : vector<8x128xf32>, vector<128x128xf32>, vector<8x128xf32> -> vector<8x128xf32>
    %46 = vector.extract_strided_slice %41 {offsets = [0, 0], sizes = [8, 256], strides = [1, 1]} : vector<8x384xf32> to vector<8x256xf32>
    %47 = arith.addf %46, %43 : vector<8x256xf32>
    %48 = arith.negf %47 : vector<8x256xf32>
    %49 = math.exp %48 : vector<8x256xf32>
    %cst_26 = arith.constant 1.000000e+00 : f32
    %50 = vector.broadcast %cst_26 : f32 to vector<8x256xf32>
    %51 = arith.addf %50, %49 : vector<8x256xf32>
    %52 = arith.divf %50, %51 : vector<8x256xf32>
    %53 = vector.extract_strided_slice %52 {offsets = [0, 0], sizes = [8, 128], strides = [1, 1]} : vector<8x256xf32> to vector<8x128xf32>
    %54 = vector.extract_strided_slice %52 {offsets = [0, 128], sizes = [8, 128], strides = [1, 1]} : vector<8x256xf32> to vector<8x128xf32>
    %55 = vector.extract_strided_slice %41 {offsets = [0, 256], sizes = [8, 128], strides = [1, 1]} : vector<8x384xf32> to vector<8x128xf32>
    %56 = arith.addf %45, %9 : vector<8x128xf32>
    %57 = arith.mulf %53, %56 : vector<8x128xf32>
    %58 = arith.addf %55, %57 : vector<8x128xf32>
    %59 = math.tanh %58 : vector<8x128xf32>
    %cst_27 = arith.constant 1.000000e+00 : f32
    %60 = vector.broadcast %cst_27 : f32 to vector<8x128xf32>
    %61 = arith.subf %60, %54 : vector<8x128xf32>
    %62 = arith.mulf %61, %59 : vector<8x128xf32>
    %63 = arith.mulf %54, %37 : vector<8x128xf32>
    %64 = arith.addf %62, %63 : vector<8x128xf32>
    %c2_i32 = arith.constant 2 : i32
    %c8_i32_28 = arith.constant 8 : i32
    %65 = arith.muli %c2_i32, %c8_i32_28 : i32
    %66 = tpu.assume_multiple %65, 8 : i32
    %67 = arith.index_cast %66 : i32 to index
    %c0_29 = arith.constant 0 : index
    %68 = vector.load %arg10[%67, %c0_29] : memref<64x384xf32, #tpu.memory_space<vmem>>, vector<8x384xf32>
    %c0_30 = arith.constant 0 : index
    %c0_31 = arith.constant 0 : index
    %69 = vector.load %arg2[%c0_30, %c0_31] : memref<128x384xf32, #tpu.memory_space<vmem>>, vector<128x256xf32>
    %cst_32 = arith.constant dense<0.000000e+00> : vector<8x256xf32>
    %70 = tpu.matmul %64, %69, %cst_32 {dimension_numbers = #tpu.dot_dimension_numbers<[1], [0], [0], [1], [0, 0, 1, 1], [], []>} : vector<8x128xf32>, vector<128x256xf32>, vector<8x256xf32> -> vector<8x256xf32>
    %c0_33 = arith.constant 0 : index
    %c256_34 = arith.constant 256 : index
    %71 = vector.load %arg2[%c0_33, %c256_34] : memref<128x384xf32, #tpu.memory_space<vmem>>, vector<128x128xf32>
    %cst_35 = arith.constant dense<0.000000e+00> : vector<8x128xf32>
    %72 = tpu.matmul %64, %71, %cst_35 {dimension_numbers = #tpu.dot_dimension_numbers<[1], [0], [0], [1], [0, 0, 1, 1], [], []>} : vector<8x128xf32>, vector<128x128xf32>, vector<8x128xf32> -> vector<8x128xf32>
    %73 = vector.extract_strided_slice %68 {offsets = [0, 0], sizes = [8, 256], strides = [1, 1]} : vector<8x384xf32> to vector<8x256xf32>
    %74 = arith.addf %73, %70 : vector<8x256xf32>
    %75 = arith.negf %74 : vector<8x256xf32>
    %76 = math.exp %75 : vector<8x256xf32>
    %cst_36 = arith.constant 1.000000e+00 : f32
    %77 = vector.broadcast %cst_36 : f32 to vector<8x256xf32>
    %78 = arith.addf %77, %76 : vector<8x256xf32>
    %79 = arith.divf %77, %78 : vector<8x256xf32>
    %80 = vector.extract_strided_slice %79 {offsets = [0, 0], sizes = [8, 128], strides = [1, 1]} : vector<8x256xf32> to vector<8x128xf32>
    %81 = vector.extract_strided_slice %79 {offsets = [0, 128], sizes = [8, 128], strides = [1, 1]} : vector<8x256xf32> to vector<8x128xf32>
    %82 = vector.extract_strided_slice %68 {offsets = [0, 256], sizes = [8, 128], strides = [1, 1]} : vector<8x384xf32> to vector<8x128xf32>
    %83 = arith.addf %72, %9 : vector<8x128xf32>
    %84 = arith.mulf %80, %83 : vector<8x128xf32>
    %85 = arith.addf %82, %84 : vector<8x128xf32>
    %86 = math.tanh %85 : vector<8x128xf32>
    %cst_37 = arith.constant 1.000000e+00 : f32
    %87 = vector.broadcast %cst_37 : f32 to vector<8x128xf32>
    %88 = arith.subf %87, %81 : vector<8x128xf32>
    %89 = arith.mulf %88, %86 : vector<8x128xf32>
    %90 = arith.mulf %81, %64 : vector<8x128xf32>
    %91 = arith.addf %89, %90 : vector<8x128xf32>
    %c3_i32 = arith.constant 3 : i32
    %c8_i32_38 = arith.constant 8 : i32
    %92 = arith.muli %c3_i32, %c8_i32_38 : i32
    %93 = tpu.assume_multiple %92, 8 : i32
    %94 = arith.index_cast %93 : i32 to index
    %c0_39 = arith.constant 0 : index
    %95 = vector.load %arg10[%94, %c0_39] : memref<64x384xf32, #tpu.memory_space<vmem>>, vector<8x384xf32>
    %c0_40 = arith.constant 0 : index
    %c0_41 = arith.constant 0 : index
    %96 = vector.load %arg2[%c0_40, %c0_41] : memref<128x384xf32, #tpu.memory_space<vmem>>, vector<128x256xf32>
    %cst_42 = arith.constant dense<0.000000e+00> : vector<8x256xf32>
    %97 = tpu.matmul %91, %96, %cst_42 {dimension_numbers = #tpu.dot_dimension_numbers<[1], [0], [0], [1], [0, 0, 1, 1], [], []>} : vector<8x128xf32>, vector<128x256xf32>, vector<8x256xf32> -> vector<8x256xf32>
    %c0_43 = arith.constant 0 : index
    %c256_44 = arith.constant 256 : index
    %98 = vector.load %arg2[%c0_43, %c256_44] : memref<128x384xf32, #tpu.memory_space<vmem>>, vector<128x128xf32>
    %cst_45 = arith.constant dense<0.000000e+00> : vector<8x128xf32>
    %99 = tpu.matmul %91, %98, %cst_45 {dimension_numbers = #tpu.dot_dimension_numbers<[1], [0], [0], [1], [0, 0, 1, 1], [], []>} : vector<8x128xf32>, vector<128x128xf32>, vector<8x128xf32> -> vector<8x128xf32>
    %100 = vector.extract_strided_slice %95 {offsets = [0, 0], sizes = [8, 256], strides = [1, 1]} : vector<8x384xf32> to vector<8x256xf32>
    %101 = arith.addf %100, %97 : vector<8x256xf32>
    %102 = arith.negf %101 : vector<8x256xf32>
    %103 = math.exp %102 : vector<8x256xf32>
    %cst_46 = arith.constant 1.000000e+00 : f32
    %104 = vector.broadcast %cst_46 : f32 to vector<8x256xf32>
    %105 = arith.addf %104, %103 : vector<8x256xf32>
    %106 = arith.divf %104, %105 : vector<8x256xf32>
    %107 = vector.extract_strided_slice %106 {offsets = [0, 0], sizes = [8, 128], strides = [1, 1]} : vector<8x256xf32> to vector<8x128xf32>
    %108 = vector.extract_strided_slice %106 {offsets = [0, 128], sizes = [8, 128], strides = [1, 1]} : vector<8x256xf32> to vector<8x128xf32>
    %109 = vector.extract_strided_slice %95 {offsets = [0, 256], sizes = [8, 128], strides = [1, 1]} : vector<8x384xf32> to vector<8x128xf32>
    %110 = arith.addf %99, %9 : vector<8x128xf32>
    %111 = arith.mulf %107, %110 : vector<8x128xf32>
    %112 = arith.addf %109, %111 : vector<8x128xf32>
    %113 = math.tanh %112 : vector<8x128xf32>
    %cst_47 = arith.constant 1.000000e+00 : f32
    %114 = vector.broadcast %cst_47 : f32 to vector<8x128xf32>
    %115 = arith.subf %114, %108 : vector<8x128xf32>
    %116 = arith.mulf %115, %113 : vector<8x128xf32>
    %117 = arith.mulf %108, %91 : vector<8x128xf32>
    %118 = arith.addf %116, %117 : vector<8x128xf32>
    %c4_i32 = arith.constant 4 : i32
    %c8_i32_48 = arith.constant 8 : i32
    %119 = arith.muli %c4_i32, %c8_i32_48 : i32
    %120 = tpu.assume_multiple %119, 8 : i32
    %121 = arith.index_cast %120 : i32 to index
    %c0_49 = arith.constant 0 : index
    %122 = vector.load %arg10[%121, %c0_49] : memref<64x384xf32, #tpu.memory_space<vmem>>, vector<8x384xf32>
    %c0_50 = arith.constant 0 : index
    %c0_51 = arith.constant 0 : index
    %123 = vector.load %arg2[%c0_50, %c0_51] : memref<128x384xf32, #tpu.memory_space<vmem>>, vector<128x256xf32>
    %cst_52 = arith.constant dense<0.000000e+00> : vector<8x256xf32>
    %124 = tpu.matmul %118, %123, %cst_52 {dimension_numbers = #tpu.dot_dimension_numbers<[1], [0], [0], [1], [0, 0, 1, 1], [], []>} : vector<8x128xf32>, vector<128x256xf32>, vector<8x256xf32> -> vector<8x256xf32>
    %c0_53 = arith.constant 0 : index
    %c256_54 = arith.constant 256 : index
    %125 = vector.load %arg2[%c0_53, %c256_54] : memref<128x384xf32, #tpu.memory_space<vmem>>, vector<128x128xf32>
    %cst_55 = arith.constant dense<0.000000e+00> : vector<8x128xf32>
    %126 = tpu.matmul %118, %125, %cst_55 {dimension_numbers = #tpu.dot_dimension_numbers<[1], [0], [0], [1], [0, 0, 1, 1], [], []>} : vector<8x128xf32>, vector<128x128xf32>, vector<8x128xf32> -> vector<8x128xf32>
    %127 = vector.extract_strided_slice %122 {offsets = [0, 0], sizes = [8, 256], strides = [1, 1]} : vector<8x384xf32> to vector<8x256xf32>
    %128 = arith.addf %127, %124 : vector<8x256xf32>
    %129 = arith.negf %128 : vector<8x256xf32>
    %130 = math.exp %129 : vector<8x256xf32>
    %cst_56 = arith.constant 1.000000e+00 : f32
    %131 = vector.broadcast %cst_56 : f32 to vector<8x256xf32>
    %132 = arith.addf %131, %130 : vector<8x256xf32>
    %133 = arith.divf %131, %132 : vector<8x256xf32>
    %134 = vector.extract_strided_slice %133 {offsets = [0, 0], sizes = [8, 128], strides = [1, 1]} : vector<8x256xf32> to vector<8x128xf32>
    %135 = vector.extract_strided_slice %133 {offsets = [0, 128], sizes = [8, 128], strides = [1, 1]} : vector<8x256xf32> to vector<8x128xf32>
    %136 = vector.extract_strided_slice %122 {offsets = [0, 256], sizes = [8, 128], strides = [1, 1]} : vector<8x384xf32> to vector<8x128xf32>
    %137 = arith.addf %126, %9 : vector<8x128xf32>
    %138 = arith.mulf %134, %137 : vector<8x128xf32>
    %139 = arith.addf %136, %138 : vector<8x128xf32>
    %140 = math.tanh %139 : vector<8x128xf32>
    %cst_57 = arith.constant 1.000000e+00 : f32
    %141 = vector.broadcast %cst_57 : f32 to vector<8x128xf32>
    %142 = arith.subf %141, %135 : vector<8x128xf32>
    %143 = arith.mulf %142, %140 : vector<8x128xf32>
    %144 = arith.mulf %135, %118 : vector<8x128xf32>
    %145 = arith.addf %143, %144 : vector<8x128xf32>
    %c5_i32 = arith.constant 5 : i32
    %c8_i32_58 = arith.constant 8 : i32
    %146 = arith.muli %c5_i32, %c8_i32_58 : i32
    %147 = tpu.assume_multiple %146, 8 : i32
    %148 = arith.index_cast %147 : i32 to index
    %c0_59 = arith.constant 0 : index
    %149 = vector.load %arg10[%148, %c0_59] : memref<64x384xf32, #tpu.memory_space<vmem>>, vector<8x384xf32>
    %c0_60 = arith.constant 0 : index
    %c0_61 = arith.constant 0 : index
    %150 = vector.load %arg2[%c0_60, %c0_61] : memref<128x384xf32, #tpu.memory_space<vmem>>, vector<128x256xf32>
    %cst_62 = arith.constant dense<0.000000e+00> : vector<8x256xf32>
    %151 = tpu.matmul %145, %150, %cst_62 {dimension_numbers = #tpu.dot_dimension_numbers<[1], [0], [0], [1], [0, 0, 1, 1], [], []>} : vector<8x128xf32>, vector<128x256xf32>, vector<8x256xf32> -> vector<8x256xf32>
    %c0_63 = arith.constant 0 : index
    %c256_64 = arith.constant 256 : index
    %152 = vector.load %arg2[%c0_63, %c256_64] : memref<128x384xf32, #tpu.memory_space<vmem>>, vector<128x128xf32>
    %cst_65 = arith.constant dense<0.000000e+00> : vector<8x128xf32>
    %153 = tpu.matmul %145, %152, %cst_65 {dimension_numbers = #tpu.dot_dimension_numbers<[1], [0], [0], [1], [0, 0, 1, 1], [], []>} : vector<8x128xf32>, vector<128x128xf32>, vector<8x128xf32> -> vector<8x128xf32>
    %154 = vector.extract_strided_slice %149 {offsets = [0, 0], sizes = [8, 256], strides = [1, 1]} : vector<8x384xf32> to vector<8x256xf32>
    %155 = arith.addf %154, %151 : vector<8x256xf32>
    %156 = arith.negf %155 : vector<8x256xf32>
    %157 = math.exp %156 : vector<8x256xf32>
    %cst_66 = arith.constant 1.000000e+00 : f32
    %158 = vector.broadcast %cst_66 : f32 to vector<8x256xf32>
    %159 = arith.addf %158, %157 : vector<8x256xf32>
    %160 = arith.divf %158, %159 : vector<8x256xf32>
    %161 = vector.extract_strided_slice %160 {offsets = [0, 0], sizes = [8, 128], strides = [1, 1]} : vector<8x256xf32> to vector<8x128xf32>
    %162 = vector.extract_strided_slice %160 {offsets = [0, 128], sizes = [8, 128], strides = [1, 1]} : vector<8x256xf32> to vector<8x128xf32>
    %163 = vector.extract_strided_slice %149 {offsets = [0, 256], sizes = [8, 128], strides = [1, 1]} : vector<8x384xf32> to vector<8x128xf32>
    %164 = arith.addf %153, %9 : vector<8x128xf32>
    %165 = arith.mulf %161, %164 : vector<8x128xf32>
    %166 = arith.addf %163, %165 : vector<8x128xf32>
    %167 = math.tanh %166 : vector<8x128xf32>
    %cst_67 = arith.constant 1.000000e+00 : f32
    %168 = vector.broadcast %cst_67 : f32 to vector<8x128xf32>
    %169 = arith.subf %168, %162 : vector<8x128xf32>
    %170 = arith.mulf %169, %167 : vector<8x128xf32>
    %171 = arith.mulf %162, %145 : vector<8x128xf32>
    %172 = arith.addf %170, %171 : vector<8x128xf32>
    %c6_i32 = arith.constant 6 : i32
    %c8_i32_68 = arith.constant 8 : i32
    %173 = arith.muli %c6_i32, %c8_i32_68 : i32
    %174 = tpu.assume_multiple %173, 8 : i32
    %175 = arith.index_cast %174 : i32 to index
    %c0_69 = arith.constant 0 : index
    %176 = vector.load %arg10[%175, %c0_69] : memref<64x384xf32, #tpu.memory_space<vmem>>, vector<8x384xf32>
    %c0_70 = arith.constant 0 : index
    %c0_71 = arith.constant 0 : index
    %177 = vector.load %arg2[%c0_70, %c0_71] : memref<128x384xf32, #tpu.memory_space<vmem>>, vector<128x256xf32>
    %cst_72 = arith.constant dense<0.000000e+00> : vector<8x256xf32>
    %178 = tpu.matmul %172, %177, %cst_72 {dimension_numbers = #tpu.dot_dimension_numbers<[1], [0], [0], [1], [0, 0, 1, 1], [], []>} : vector<8x128xf32>, vector<128x256xf32>, vector<8x256xf32> -> vector<8x256xf32>
    %c0_73 = arith.constant 0 : index
    %c256_74 = arith.constant 256 : index
    %179 = vector.load %arg2[%c0_73, %c256_74] : memref<128x384xf32, #tpu.memory_space<vmem>>, vector<128x128xf32>
    %cst_75 = arith.constant dense<0.000000e+00> : vector<8x128xf32>
    %180 = tpu.matmul %172, %179, %cst_75 {dimension_numbers = #tpu.dot_dimension_numbers<[1], [0], [0], [1], [0, 0, 1, 1], [], []>} : vector<8x128xf32>, vector<128x128xf32>, vector<8x128xf32> -> vector<8x128xf32>
    %181 = vector.extract_strided_slice %176 {offsets = [0, 0], sizes = [8, 256], strides = [1, 1]} : vector<8x384xf32> to vector<8x256xf32>
    %182 = arith.addf %181, %178 : vector<8x256xf32>
    %183 = arith.negf %182 : vector<8x256xf32>
    %184 = math.exp %183 : vector<8x256xf32>
    %cst_76 = arith.constant 1.000000e+00 : f32
    %185 = vector.broadcast %cst_76 : f32 to vector<8x256xf32>
    %186 = arith.addf %185, %184 : vector<8x256xf32>
    %187 = arith.divf %185, %186 : vector<8x256xf32>
    %188 = vector.extract_strided_slice %187 {offsets = [0, 0], sizes = [8, 128], strides = [1, 1]} : vector<8x256xf32> to vector<8x128xf32>
    %189 = vector.extract_strided_slice %187 {offsets = [0, 128], sizes = [8, 128], strides = [1, 1]} : vector<8x256xf32> to vector<8x128xf32>
    %190 = vector.extract_strided_slice %176 {offsets = [0, 256], sizes = [8, 128], strides = [1, 1]} : vector<8x384xf32> to vector<8x128xf32>
    %191 = arith.addf %180, %9 : vector<8x128xf32>
    %192 = arith.mulf %188, %191 : vector<8x128xf32>
    %193 = arith.addf %190, %192 : vector<8x128xf32>
    %194 = math.tanh %193 : vector<8x128xf32>
    %cst_77 = arith.constant 1.000000e+00 : f32
    %195 = vector.broadcast %cst_77 : f32 to vector<8x128xf32>
    %196 = arith.subf %195, %189 : vector<8x128xf32>
    %197 = arith.mulf %196, %194 : vector<8x128xf32>
    %198 = arith.mulf %189, %172 : vector<8x128xf32>
    %199 = arith.addf %197, %198 : vector<8x128xf32>
    %c7_i32 = arith.constant 7 : i32
    %c8_i32_78 = arith.constant 8 : i32
    %200 = arith.muli %c7_i32, %c8_i32_78 : i32
    %201 = tpu.assume_multiple %200, 8 : i32
    %202 = arith.index_cast %201 : i32 to index
    %c0_79 = arith.constant 0 : index
    %203 = vector.load %arg10[%202, %c0_79] : memref<64x384xf32, #tpu.memory_space<vmem>>, vector<8x384xf32>
    %c0_80 = arith.constant 0 : index
    %c0_81 = arith.constant 0 : index
    %204 = vector.load %arg2[%c0_80, %c0_81] : memref<128x384xf32, #tpu.memory_space<vmem>>, vector<128x256xf32>
    %cst_82 = arith.constant dense<0.000000e+00> : vector<8x256xf32>
    %205 = tpu.matmul %199, %204, %cst_82 {dimension_numbers = #tpu.dot_dimension_numbers<[1], [0], [0], [1], [0, 0, 1, 1], [], []>} : vector<8x128xf32>, vector<128x256xf32>, vector<8x256xf32> -> vector<8x256xf32>
    %c0_83 = arith.constant 0 : index
    %c256_84 = arith.constant 256 : index
    %206 = vector.load %arg2[%c0_83, %c256_84] : memref<128x384xf32, #tpu.memory_space<vmem>>, vector<128x128xf32>
    %cst_85 = arith.constant dense<0.000000e+00> : vector<8x128xf32>
    %207 = tpu.matmul %199, %206, %cst_85 {dimension_numbers = #tpu.dot_dimension_numbers<[1], [0], [0], [1], [0, 0, 1, 1], [], []>} : vector<8x128xf32>, vector<128x128xf32>, vector<8x128xf32> -> vector<8x128xf32>
    %208 = vector.extract_strided_slice %203 {offsets = [0, 0], sizes = [8, 256], strides = [1, 1]} : vector<8x384xf32> to vector<8x256xf32>
    %209 = arith.addf %208, %205 : vector<8x256xf32>
    %210 = arith.negf %209 : vector<8x256xf32>
    %211 = math.exp %210 : vector<8x256xf32>
    %cst_86 = arith.constant 1.000000e+00 : f32
    %212 = vector.broadcast %cst_86 : f32 to vector<8x256xf32>
    %213 = arith.addf %212, %211 : vector<8x256xf32>
    %214 = arith.divf %212, %213 : vector<8x256xf32>
    %215 = vector.extract_strided_slice %214 {offsets = [0, 0], sizes = [8, 128], strides = [1, 1]} : vector<8x256xf32> to vector<8x128xf32>
    %216 = vector.extract_strided_slice %214 {offsets = [0, 128], sizes = [8, 128], strides = [1, 1]} : vector<8x256xf32> to vector<8x128xf32>
    %217 = vector.extract_strided_slice %203 {offsets = [0, 256], sizes = [8, 128], strides = [1, 1]} : vector<8x384xf32> to vector<8x128xf32>
    %218 = arith.addf %207, %9 : vector<8x128xf32>
    %219 = arith.mulf %215, %218 : vector<8x128xf32>
    %220 = arith.addf %217, %219 : vector<8x128xf32>
    %221 = math.tanh %220 : vector<8x128xf32>
    %cst_87 = arith.constant 1.000000e+00 : f32
    %222 = vector.broadcast %cst_87 : f32 to vector<8x128xf32>
    %223 = arith.subf %222, %216 : vector<8x128xf32>
    %224 = arith.mulf %223, %221 : vector<8x128xf32>
    %225 = arith.mulf %216, %199 : vector<8x128xf32>
    %226 = arith.addf %224, %225 : vector<8x128xf32>
    %c8_i32_88 = arith.constant 8 : i32
    %c0_89 = arith.constant 0 : index
    %c0_90 = arith.constant 0 : index
    %227 = vector.load %arg5[%c0_89, %c0_90] : memref<128x10xf32, #tpu.memory_space<vmem>>, vector<128x10xf32>
    %cst_91 = arith.constant dense<0.000000e+00> : vector<8x10xf32>
    %228 = tpu.matmul %226, %227, %cst_91 {dimension_numbers = #tpu.dot_dimension_numbers<[1], [0], [0], [1], [0, 0, 1, 1], [], []>} : vector<8x128xf32>, vector<128x10xf32>, vector<8x10xf32> -> vector<8x10xf32>
    %c0_92 = arith.constant 0 : index
    %c0_93 = arith.constant 0 : index
    %229 = vector.load %arg6[%c0_92, %c0_93] : memref<1x10xf32, #tpu.memory_space<vmem>>, vector<1x10xf32>
    %230 = vector.broadcast %229 : vector<1x10xf32> to vector<8x10xf32>
    %231 = arith.addf %228, %230 : vector<8x10xf32>
    %cst_94 = arith.constant 0.000000e+00 : f32
    %232 = vector.broadcast %cst_94 : f32 to vector<8x10xf32>
    %233 = arith.maximumf %231, %232 : vector<8x10xf32>
    %c0_95 = arith.constant 0 : index
    %c0_96 = arith.constant 0 : index
    %234 = vector.load %arg7[%c0_95, %c0_96] : memref<10x1xf32, #tpu.memory_space<vmem>>, vector<10x1xf32>
    %cst_97 = arith.constant dense<0.000000e+00> : vector<8x1xf32>
    %235 = tpu.matmul %233, %234, %cst_97 {dimension_numbers = #tpu.dot_dimension_numbers<[1], [0], [0], [1], [0, 0, 1, 1], [], []>} : vector<8x10xf32>, vector<10x1xf32>, vector<8x1xf32> -> vector<8x1xf32>
    %c0_98 = arith.constant 0 : index
    %c0_99 = arith.constant 0 : index
    %236 = vector.load %arg8[%c0_98, %c0_99] : memref<1x1xf32, #tpu.memory_space<vmem>>, vector<1x1xf32>
    %237 = vector.broadcast %236 : vector<1x1xf32> to vector<8x1xf32>
    %238 = arith.addf %235, %237 : vector<8x1xf32>
    %c0_100 = arith.constant 0 : index
    %c0_101 = arith.constant 0 : index
    %239 = vector.load %arg9[%c0_100, %c0_101] : memref<8x1xf32, #tpu.memory_space<vmem>>, vector<8x1xf32>
    tpu.vector_store %arg9[%c0_100, %c0_101], %238 {strides = array<i32>} : memref<8x1xf32, #tpu.memory_space<vmem>>, vector<8x1xf32>,
    return
  }
}

</mosaic_0001>

<bundles_post_ra>
// kernel: eqrnn_forward.1
= control target key start
LH: loop header
LB: loop body
LE: loop exit
PB: predicated region body
PF: predicated region fallthrough
CT: control target
= control target key end

     0   :  { %s3742_s0 = inlined_call_operand.vmem [shape: f32[64,12], index: 0, kind: input, shape index: {}]   ;;  %s3743_s1 = inlined_call_operand.vmem [shape: f32[12,384], index: 1, kind: input, shape index: {}]   ;;  %s3744_s2 = inlined_call_operand.hbm [shape: f32[128,384], index: 2, kind: input, shape index: {}]   ;;  %s3745_s3 = inlined_call_operand.vmem [shape: f32[1,384], index: 3, kind: input, shape index: {}]   ;;  %s3746_s4 = inlined_call_operand.vmem [shape: f32[1,128], index: 4, kind: input, shape index: {}]   ;;  %s3747_s5 = inlined_call_operand.vmem [shape: f32[128,10], index: 5, kind: input, shape index: {}]   ;;  %s3748_s6 = inlined_call_operand.vmem [shape: f32[1,10], index: 6, kind: input, shape index: {}]   ;;  %s3749_s7 = inlined_call_operand.vmem [shape: f32[10,1], index: 7, kind: input, shape index: {}]   ;;  %s3750_s8 = inlined_call_operand.<no memory space> [shape: f32[1,1], index: 8, kind: input, shape index: {}]   ;;  %s3751_s9 = inlined_call_operand.vmem [shape: f32[8,1], index: 9, kind: output, shape index: {}]  }
   0x1   :  { %v14_v0 = vstv %s3750_s8 }
   0x2   :  { %15 = vst [vmem:[#allocation3] sm:$0x1] %v14_v0 }
   0x3   :  { %16 = vsyncpa [#allocation5], 0  ;;  %s3125_s11 = smov [#allocation4]   ;;  %s3101_s15 = scalar_lea.hbm %s3744_s2, 6144 }
   0x4   :  { %s26_s12 = sshll.u32 %s3125_s11, 4  ;;  %p3102_p0 = scmp.ne.s32.totalorder %s3744_s2, %s3101_s15  ;;  %s27_s12 = int_to_ptr.vmem [resolvable:$true] %s26_s12 }
   0x5   :  { %p3105_p1 = scmp.lt.u32.totalorder %s3101_s15, %s3744_s2 }
   0x7   :  { %p3107_p2 = pnand %p3105_p1, %p3102_p0 }
   0x9   :  { %3110 = shalt.err (!%p3107_p2)
}
   0xa   :  { %s3111_s8 = scalar_lea.vmem %s27_s12, 6144  ;;  %p3116_p4 = scmp.lt.s32.totalorder %s27_s12, %s27_s12 }
   0xb   :  { %p3112_p3 = scmp.ne.s32.totalorder %s27_s12, %s3111_s8  ;;  %p3117_p5 = scmp.lt.s32.totalorder %s3111_s8, %s3111_s8 }
   0xd   :  { %p3118_p6 = por %p3117_p5, %p3116_p4 }
   0xf   :  { %p3119_p7 = pnand %p3118_p6, %p3112_p3 }
  0x11   :  { %3122 = shalt.err (!%p3119_p7)
}
  0x12   :  { %s3126_s20 = smov 384   ;;  %s3127_s21 = smov 24  }
  0x13   :  { %32 = dma.hbm_to_vmem [thread:$0]  %s3744_s2, 6144, %s27_s12, [#allocation5], %s3126_s20, %s3126_s20, %s3127_s21  }
  0x14   :  { %3123 = dma.done.wait [#allocation5], 6144  }
  0x15   :  { %3124 = vsyncadd [#allocation5], 4294961152  ;;  %v3128_v1 = vmov 0.0   ;;  %vm104_vm0 = vcmask 1043456   ;;  %vm3129_vm1 = vmmov 1   ;;  %v57_v3 = vld [vmem:[%s3743_s1 + $0x8] sm:$0xff] }
  0x16   :  { %178 = vmatprep.mubr.f32.mxu0 %v3128_v1  ;;  %vm3199_vm2 = vmpackc.low %vm104_vm0, %vm3129_vm1  ;;  %v60_v4 = vld [vmem:[%s3743_s1 + $0x20] sm:$0xf]  ;;  %v59_v7 = vld [vmem:[%s3743_s1 + $0x18] sm:$0xf]  ;;  %vm79_vm3 = vcmask 97280   ;;  %v3130_v50 = vmov 0.0|0.0  }
  0x17   :  { %v56_v5 = vld [vmem:[%s3743_s1] sm:$0xff]  ;;  %v2494_v6 = vpack.c.bf16 %v60_v4, %v57_v3  ;;  %v370_v9 = vld [vmem:[#allocation4 + $0x8] sm:$0xff]  ;;  %v376_v16 = vld [vmem:[#allocation4 + $0x50] sm:$0xff]  ;;  %vm3131_vm4 = vmmov 0   ;;  %vm1862_vm5 = vcmask 1041408   ;;  %vm1858_vm7 = vcmask 80896  }
  0x18   :  { %v48_v8 = vld [vmem:[%s3742_s0] sm:$0xff]  ;;  %v2497_v10 = vpack.c.bf16 %v59_v7, %v56_v5  ;;  %v373_v19 = vld [vmem:[#allocation4 + $0x30] sm:$0xff]  ;;  %v375_v20 = vld [vmem:[#allocation4 + $0x48] sm:$0xff]  ;;  %vm1936_vm8 = vcmask 7168  }
  0x19   :  { %v372_v11 = vld [vmem:[#allocation4 + $0x20] sm:$0xff]  ;;  %v371_v13 = vld [vmem:[#allocation4 + $0x18] sm:$0xff]  ;;  %2160 = vmatprep.mubr.msk.f32.mxu1 %vm79_vm3, %v48_v8  ;;  %2496 = vmatprep.subr.msk.bf16.mxu0 %vm3199_vm2, %v2494_v6  ;;  %v378_v21 = vld [vmem:[#allocation4 + $0x68] sm:$0xff]  ;;  %v3236_v24 = vpack.c.bf16 %v375_v20, %v373_v19 }
  0x1a   :  { %v369_v12 = vld [vmem:[#allocation4] sm:$0xff]  ;;  %v3221_v14 = vpack.c.bf16 %v372_v11, %v370_v9  ;;  %v374_v15 = vld [vmem:[#allocation4 + $0x38] sm:$0xff]  ;;  %2499 = vmatpush1.bf16.msk.msra.mxu0 %vm3199_vm2, %v2497_v10  ;;  %v384_v29 = vld [vmem:[#allocation4 + $0xb0] sm:$0xff] }
  0x1b   :  { %v3225_v17 = vpack.c.bf16 %v371_v13, %v369_v12  ;;  %v3228_v18 = vpack.c.bf16 %v376_v16, %v374_v15  ;;  %v380_v22 = vld [vmem:[#allocation4 + $0x80] sm:$0xff]  ;;  %v379_v27 = vld [vmem:[#allocation4 + $0x78] sm:$0xff]  ;;  %v58_v30 = vld [vmem:[%s3743_s1 + $0x10] sm:$0xff] }
  0x1c   :  { %2507 = vmatprep.subr.bf16.mxu0 %v3221_v14  ;;  %v49_v23 = vld [vmem:[%s3742_s0 + $0x8] sm:$0xff]  ;;  %v3239_v25 = vpack.c.bf16 %v380_v22, %v378_v21  ;;  %v382_v28 = vld [vmem:[#allocation4 + $0x98] sm:$0xff]  ;;  %v50_v32 = vld [vmem:[%s3742_s0 + $0x10] sm:$0xff] }
  0x1d   :  { %1952 = vmatmul.mubr.msk.f32.vlgmr.msra.gmra.mrb[0].mxu0 %vm79_vm3, %v48_v8  ;;  %v377_v26 = vld [vmem:[#allocation4 + $0x60] sm:$0xff]  ;;  %v3256_v35 = vpack.c.bf16 %v384_v29, %v382_v28  ;;  %v381_v36 = vld [vmem:[#allocation4 + $0x90] sm:$0xff]  ;;  %v383_v37 = vld [vmem:[#allocation4 + $0xa8] sm:$0xff] }
  0x1e   :  { %2509 = vmatpush1.bf16.msra.mxu0 %v3225_v17  ;;  %184 = vmatprep.mubr.f32.mxu0 %v3128_v1  ;;  %v61_v31 = vld [vmem:[%s3743_s1 + $0x28] sm:$0xf]  ;;  %v3253_v33 = vpack.c.bf16 %v379_v27, %v377_v26  ;;  %v472_v38 = vld [vmem:[#allocation4 + $0x10] sm:$0xff]  ;;  %v3270_v44 = vpack.c.bf16 %v383_v37, %v381_v36  ;;  %v475_v46 = vld [vmem:[#allocation4 + $0x58] sm:$0xff]  ;;  %v64_v37 = vlaneseq }
  0x1f   :  { %2511 = vmatprep.subr.bf16.mxu0 %v3228_v18  ;;  %v2500_v34 = vpack.c.bf16 %v61_v31, %v58_v30  ;;  %v386_v39 = vld [vmem:[#allocation4 + $0xc8] sm:$0xff]  ;;  %v388_v40 = vld [vmem:[#allocation4 + $0xe0] sm:$0xff]  ;;  %v51_v43 = vld [vmem:[%s3742_s0 + $0x18] sm:$0xff] }
  0x20   :  { %v473_v41 = vld [vmem:[#allocation4 + $0x28] sm:$0xff]  ;;  %v474_v45 = vld [vmem:[#allocation4 + $0x40] sm:$0xff]  ;;  %v3273_v47 = vpack.c.bf16 %v388_v40, %v386_v39  ;;  %v387_v49 = vld [vmem:[#allocation4 + $0xd8] sm:$0xff] }
  0x21   :  { %1953 = vmatmul.mubr.msk.f32.gmra.mrb[2].mxu0 %vm79_vm3, %v49_v23  ;;  %2502 = vmatprep.subr.msk.bf16.mxu1 %vm3199_vm2, %v2500_v34  ;;  %v3263_v42 = vpack.c.bf16 %v473_v41, %v472_v38  ;;  %v385_v48 = vld [vmem:[#allocation4 + $0xc0] sm:$0xff]  ;;  %v390_v51 = vld [vmem:[#allocation4 + $0xf8] sm:$0xff]  ;;  %v392_v52 = vld [vmem:[#allocation4 + $0x110] sm:$0xff]  ;;  %v3279_v53 = vpack.c.bf16 %v475_v46, %v474_v45  ;;  %v65_v38 = vshrl.u32 %v64_v37, 7 }
  0x22   :  { %2513 = vmatpush1.bf16.msra.mxu0 %v3236_v24  ;;  %190 = vmatprep.mubr.f32.mxu0 %v3128_v1  ;;  %v52_v54 = vld [vmem:[%s3742_s0 + $0x20] sm:$0xff]  ;;  %v3286_v55 = vpack.c.bf16 %v387_v49, %v385_v48  ;;  %v476_v56 = vld [vmem:[#allocation4 + $0x70] sm:$0xff]  ;;  %v477_v57 = vld [vmem:[#allocation4 + $0x88] sm:$0xff]  ;;  %v3289_v58 = vpack.c.bf16 %v392_v52, %v390_v51 }
  0x23   :  { %2515 = vmatprep.subr.bf16.mxu0 %v3239_v25  ;;  %2505 = vmatpush3.bf16.msk.msra.mxu1 %vm3199_vm2, %v2500_v34  ;;  %v389_v59 = vld [vmem:[#allocation4 + $0xf0] sm:$0xff]  ;;  %v391_v60 = vld [vmem:[#allocation4 + $0x108] sm:$0xff]  ;;  %v396_v62 = vld [vmem:[#allocation4 + $0x140] sm:$0xff]  ;;  %v3295_v63 = vpack.c.bf16 %v477_v57, %v476_v56  ;;  %v74_v39 = vsub.s32 2, %v65_v38  ;;  %v70_v57 = vsub.s32 1, %v65_v38 }
  0x24   :  { %2538 = vmatprep.subr.bf16.mxu1 %v3130_v50  ;;  %v394_v61 = vld [vmem:[#allocation4 + $0x128] sm:$0xff]  ;;  %v3302_v2 = vpack.c.bf16 %v391_v60, %v389_v59  ;;  %v478_v3 = vld [vmem:[#allocation4 + $0xa0] sm:$0xff]  ;;  %v479_v4 = vld [vmem:[#allocation4 + $0xb8] sm:$0xff] }
  0x25   :  { %1954 = vmatmul.mubr.msk.f32.gmra.mrb[4].mxu0 %vm79_vm3, %v50_v32  ;;  %v53_v0 = vld [vmem:[%s3742_s0 + $0x28] sm:$0xff]  ;;  %v3305_v5 = vpack.c.bf16 %v396_v62, %v394_v61  ;;  %v395_v7 = vld [vmem:[#allocation4 + $0x138] sm:$0xff]  ;;  %v400_v9 = vld [vmem:[#allocation4 + $0x170] sm:$0xff]  ;;  %v3311_v10 = vpack.c.bf16 %v479_v4, %v478_v3 }
  0x26   :  { %2517 = vmatpush1.bf16.msra.mxu0 %v3253_v33  ;;  %196 = vmatprep.mubr.f32.mxu0 %v3128_v1  ;;  %v393_v6 = vld [vmem:[#allocation4 + $0x120] sm:$0xff]  ;;  %v398_v8 = vld [vmem:[#allocation4 + $0x158] sm:$0xff]  ;;  %v54_v11 = vld [vmem:[%s3742_s0 + $0x30] sm:$0xff] }
  0x27   :  { %2519 = vmatprep.subr.bf16.mxu0 %v3256_v35  ;;  %2161 = vmatmul.mubr.msk.f32.vlgmr.msra.gmra.mrb[0].mxu1 %vm79_vm3, %v49_v23  ;;  %v3318_v12 = vpack.c.bf16 %v395_v7, %v393_v6  ;;  %v480_v13 = vld [vmem:[#allocation4 + $0xd0] sm:$0xff]  ;;  %v481_v15 = vld [vmem:[#allocation4 + $0xe8] sm:$0xff]  ;;  %v3321_v16 = vpack.c.bf16 %v400_v9, %v398_v8  ;;  %v482_v26 = vld [vmem:[#allocation4 + $0x100] sm:$0xff] }
  0x28   :  { %2540 = vmatpush3.bf16.msra.mxu1 %v3263_v42  ;;  %2163 = vmatprep.mubr.msk.f32.mxu1 %vm79_vm3, %v50_v32  ;;  %v397_v19 = vld [vmem:[#allocation4 + $0x150] sm:$0xff]  ;;  %v399_v20 = vld [vmem:[#allocation4 + $0x168] sm:$0xff]  ;;  %v3327_v21 = vpack.c.bf16 %v481_v15, %v480_v13  ;;  %v483_v27 = vld [vmem:[#allocation4 + $0x118] sm:$0xff] }
  0x29   :  { %1955 = vmatmul.mubr.msk.f32.gmra.mrb[6].mxu0 %vm79_vm3, %v51_v43  ;;  %2541 = vmatprep.subr.bf16.mxu1 %v3130_v50  ;;  %v55_v22 = vld [vmem:[%s3742_s0 + $0x38] sm:$0xff]  ;;  %v3334_v23 = vpack.c.bf16 %v399_v20, %v397_v19  ;;  %v3341_v28 = vpack.c.bf16 %v483_v27, %v482_v26  ;;  %v485_v30 = vld [vmem:[#allocation4 + $0x148] sm:$0xff]  ;;  %v486_v32 = vld [vmem:[#allocation4 + $0x160] sm:$0xff] }
  0x2a   :  { %2521 = vmatpush1.bf16.msra.mxu0 %v3270_v44  ;;  %202 = vmatprep.mubr.f32.mxu0 %v3128_v1  ;;  %v484_v29 = vld [vmem:[#allocation4 + $0x130] sm:$0xff]  ;;  %v487_v34 = vld [vmem:[#allocation4 + $0x178] sm:$0xff]  ;;  %vm2980_vm6 = vmpackc.low %vm1862_vm5, %vm3129_vm1 }
  0x2b   :  { %2523 = vmatprep.subr.bf16.mxu0 %v3273_v47  ;;  %2164 = vmatmul.mubr.msk.f32.gmra.mrb[2].mxu1 %vm79_vm3, %v51_v43  ;;  %v3351_v31 = vpack.c.bf16 %v485_v30, %v484_v29  ;;  %v3360_v36 = vpack.c.bf16 %v487_v34, %v486_v32  ;;  %v62_v40 = vld [vmem:[%s3745_s3] sm:$0x7] }
  0x2c   :  { %2543 = vmatpush3.bf16.msra.mxu1 %v3279_v53  ;;  %2166 = vmatprep.mubr.msk.f32.mxu1 %vm79_vm3, %v52_v54  ;;  %v75_v41 = vrot.slane %v62_v40, %v74_v39  ;;  %v3413_v4 = vrot.slane %v62_v40, %v70_v57  ;;  %v3424_v30 = vld [vmem:[%s3746_s4] ss:$0 sm:$0xff] }
  0x2d   :  { %1956 = vmatmul.mubr.msk.f32.gmra.mrb[8].mxu0 %vm79_vm3, %v52_v54  ;;  %2544 = vmatprep.subr.bf16.mxu1 %v3130_v50  ;;  %v66_v54 = vsub.s32 0, %v65_v38 }
  0x2e   :  { %2525 = vmatpush1.bf16.msra.mxu0 %v3286_v55  ;;  %208 = vmatprep.mubr.f32.mxu0 %v3128_v1 }
  0x2f   :  { %2527 = vmatprep.subr.bf16.mxu0 %v3289_v58  ;;  %2167 = vmatmul.mubr.msk.f32.gmra.mrb[4].mxu1 %vm79_vm3, %v53_v0  ;;  %v3409_v61 = vrot.slane %v62_v40, %v66_v54 }
  0x30   :  { %2546 = vmatpush3.bf16.msra.mxu1 %v3295_v63  ;;  %2169 = vmatprep.mubr.msk.f32.mxu1 %vm79_vm3, %v54_v11 }
  0x31   :  { %1957 = vmatmul.mubr.msk.f32.gmra.mrb[10].mxu0 %vm79_vm3, %v53_v0  ;;  %2547 = vmatprep.subr.bf16.mxu1 %v3130_v50 }
  0x32   :  { %2529 = vmatpush1.bf16.msra.mxu0 %v3302_v2  ;;  %214 = vmatprep.mubr.f32.mxu0 %v3128_v1 }
  0x33   :  { %2531 = vmatprep.subr.bf16.mxu0 %v3305_v5  ;;  %2170 = vmatmul.mubr.msk.f32.gmra.mrb[6].mxu1 %vm79_vm3, %v55_v22 }
  0x34   :  { %2549 = vmatpush3.bf16.msra.mxu1 %v3311_v10  ;;  %2204 = vmatprep.mubr.msk.f32.mxu1 %vm3131_vm4, %v3128_v1 }
  0x35   :  { %1958 = vmatmul.mubr.msk.f32.gmra.mrb[12].mxu0 %vm79_vm3, %v54_v11  ;;  %2550 = vmatprep.subr.bf16.mxu1 %v3130_v50 }
  0x36   :  { %2533 = vmatpush1.bf16.msra.mxu0 %v3318_v12  ;;  %220 = vmatprep.mubr.f32.mxu0 %v3128_v1 }
  0x37   :  { %2535 = vmatprep.subr.bf16.mxu0 %v3321_v16 }
  0x38   :  { %2552 = vmatpush3.bf16.msra.mxu1 %v3327_v21 }
  0x39   :  { %1959 = vmatmul.mubr.msk.f32.gmra.mrb[14].mxu0 %vm79_vm3, %v55_v22  ;;  %2553 = vmatprep.subr.bf16.mxu1 %v3130_v50 }
  0x3a   :  { %2537 = vmatpush1.bf16.msra.mxu0 %v3334_v23  ;;  %465 = vmatprep.mubr.f32.mxu0 %v3128_v1 }
  0x3b   :  { %2563 = vmatprep.subr.bf16.mxu0 %v3221_v14 }
  0x3c   :  { %2555 = vmatpush3.bf16.msra.mxu1 %v3341_v28 }
  0x3d   :  { %466 = vmatmul.mubr.f32.vlgmr.msra.gmra.mrb[0].mxu0 %v3128_v1  ;;  %2556 = vmatprep.subr.bf16.mxu1 %v3130_v50 }
  0x3e   :  { %2565 = vmatpush1.bf16.msra.mxu0 %v3225_v17  ;;  %649 = vmatprep.mubr.f32.mxu0 %v3128_v1 }
  0x3f   :  { %2567 = vmatprep.subr.bf16.mxu0 %v3228_v18 }
  0x40   :  { %2558 = vmatpush3.bf16.msra.mxu1 %v3351_v31 }
  0x41   :  { %2559 = vmatprep.subr.bf16.mxu1 %v3130_v50 }
  0x42   :  { %2569 = vmatpush1.bf16.msra.mxu0 %v3236_v24 }
  0x43   :  { %2571 = vmatprep.subr.bf16.mxu0 %v3239_v25 }
  0x44   :  { %2561 = vmatpush3.bf16.msra.mxu1 %v3360_v36 }
  0x45   :  { %2594 = vmatprep.subr.bf16.mxu1 %v3130_v50 }
  0x46   :  { %2573 = vmatpush1.bf16.msra.mxu0 %v3253_v33 }
  0x47   :  { %2205 = vmatmul.mubr.f32.vlgmr.msra.gmra.mrb[8].mxu1 %v3128_v1  ;;  %2575 = vmatprep.subr.bf16.mxu0 %v3256_v35 }
  0x48   :  { %2596 = vmatpush3.bf16.msra.mxu1 %v3263_v42  ;;  %2239 = vmatprep.mubr.msk.f32.mxu1 %vm3131_vm4, %v3128_v1 }
  0x49   :  { %2597 = vmatprep.subr.bf16.mxu1 %v3130_v50 }
  0x4a   :  { %2577 = vmatpush1.bf16.msra.mxu0 %v3270_v44 }
  0x4b   :  { %2579 = vmatprep.subr.bf16.mxu0 %v3273_v47 }
  0x4c   :  { %2599 = vmatpush3.bf16.msra.mxu1 %v3279_v53 }
  0x4d   :  { %2600 = vmatprep.subr.bf16.mxu1 %v3130_v50 }
  0x4e   :  { %2581 = vmatpush1.bf16.msra.mxu0 %v3286_v55 }
  0x4f   :  { %2583 = vmatprep.subr.bf16.mxu0 %v3289_v58 }
  0x50   :  { %2602 = vmatpush3.bf16.msra.mxu1 %v3295_v63 }
  0x51   :  { %2603 = vmatprep.subr.bf16.mxu1 %v3130_v50 }
  0x52   :  { %2585 = vmatpush1.bf16.msra.mxu0 %v3302_v2 }
  0x53   :  { %2587 = vmatprep.subr.bf16.mxu0 %v3305_v5 }
  0x54   :  { %2605 = vmatpush3.bf16.msra.mxu1 %v3311_v10 }
  0x55   :  { %2606 = vmatprep.subr.bf16.mxu1 %v3130_v50 }
  0x56   :  { %2589 = vmatpush1.bf16.msra.mxu0 %v3318_v12 }
  0x57   :  { %2591 = vmatprep.subr.bf16.mxu0 %v3321_v16 }
  0x58   :  { %2608 = vmatpush3.bf16.msra.mxu1 %v3327_v21 }
  0x59   :  { %2609 = vmatprep.subr.bf16.mxu1 %v3130_v50 }
  0x5a   :  { %2593 = vmatpush1.bf16.msra.mxu0 %v3334_v23 }
  0x5b   :  { %2619 = vmatprep.subr.bf16.mxu0 %v3221_v14 }
  0x5c   :  { %2611 = vmatpush3.bf16.msra.mxu1 %v3341_v28 }
  0x5d   :  { %2612 = vmatprep.subr.bf16.mxu1 %v3130_v50 }
  0x60   :  { %2614 = vmatpush3.bf16.msra.mxu1 %v3351_v31 }
  0x61   :  { %2615 = vmatprep.subr.bf16.mxu1 %v3130_v50 }
  0x64   :  { %2617 = vmatpush3.bf16.msra.mxu1 %v3360_v36 }
  0x65   :  { %2650 = vmatprep.subr.bf16.mxu1 %v3130_v50 }
  0xfa   :  { %v2162_v43 = vpop.f32.mrb[0].mxu1 }
  0xfb   :  { %v3401_v45 = vadd.f32 %v2162_v43, %v75_v41  ;;  %v293_v46 = vpop.f32.mrb[1].mxu1 }
  0xfc   :  { %v294_v38 = vadd.f32 %v293_v46, %v75_v41 }
  0xfe   :  { %v2165_v48 = vpop.f32.mrb[2].mxu1 }
  0xff   :  { %v3403_v49 = vadd.f32 %v2165_v48, %v75_v41  ;;  %v303_v51 = vpop.f32.mrb[3].mxu1 }
 0x100   :  { %v3405_v52 = vadd.f32 %v303_v51, %v75_v41 }
 0x102   :  { %v2168_v56 = vpop.f32.mrb[4].mxu1 }
 0x103   :  { %v3407_v59 = vadd.f32 %v2168_v56, %v75_v41  ;;  %v313_v60 = vpop.f32.mrb[5].mxu1 }
 0x104   :  { %v3411_v62 = vadd.f32 %v313_v60, %v75_v41 }
 0x106   :  { %v2171_v0 = vpop.f32.mrb[6].mxu1 }
 0x107   :  { %v3415_v6 = vadd.f32 %v2171_v0, %v75_v41  ;;  %v323_v7 = vpop.f32.mrb[7].mxu1 }
 0x108   :  { %v3418_v11 = vadd.f32 %v323_v7, %v75_v41 }
 0x110   :  { %v467_v3 = vpop.f32.mrb[0].mxu0 }
 0x111   :  { %v2982_v8 = vadd.f32 %v467_v3, %v3409_v61  ;;  %v469_v9 = vpop.f32.mrb[1].mxu0 }
 0x112   :  { %v2983_v15 = vadd.f32 %v469_v9, %v3413_v4 }
 0x113   :  { %v1970_v13 = vmul.f32 -1.442695, %v2982_v8 }
 0x114   :  { %v1971_v19 = vmul.f32 -1.442695, %v2983_v15 }
 0x115   :  { %3021 = vpow2.f32 %v1970_v13 }
 0x116   :  { %3023 = vpow2.f32 %v1971_v19 }
 0x11a   :  { %v568_v20 = vpop.f32.mrb[8].mxu1 }
 0x11b   :  { %v2206_v22 = vpop.f32.mrb[9].mxu1  ;;  %v569_v34 = vadd.f32 %v3424_v30, %v568_v20 }
 0x11f   :  { %v3022_v26 = vpop.eup %3021 }
 0x120   :  { %v496_v27 = vadd.f32 1.0, %v3022_v26  ;;  %v3024_v29 = vpop.eup %3023 }
 0x121   :  { %v497_v32 = vadd.f32 1.0, %v3024_v29 }
 0x122   :  { %3025 = vrcp.f32 %v496_v27 }
 0x123   :  { %3027 = vrcp.f32 %v497_v32 }
 0x12c   :  { %v3026_v37 = vpop.eup %3025 }
 0x12d   :  { %v572_v39 = vmul.f32 %v3026_v37, %v569_v34  ;;  %v3028_v43 = vpop.eup %3027 }
 0x12e   :  { %v575_v48 = vsub.f32 1.0, %v3028_v43  ;;  %v577_v56 = vmul.f32 0.0, %v3028_v43 }
 0x12f   :  { %v573_v40 = vadd.f32 %v572_v39, %v294_v38 }
 0x131   :  { %3029 = vtanh.f32 %v573_v40 }
 0x13b   :  { %v3030_v51 = vpop.eup %3029 }
 0x13c   :  { %v576_v54 = vmul.f32 %v3030_v51, %v575_v48 }
 0x13e   :  { %v578_v57 = vadd.f32 %v577_v56, %v576_v54 }
 0x140   :  { %650 = vmatmul.mubr.f32.vlgmr.msra.gmra.mrb[2].mxu0 %v578_v57  ;;  %2240 = vmatmul.mubr.f32.vlgmr.msra.gmra.mrb[10].mxu1 %v578_v57 }
 0x141   :  { %2621 = vmatpush1.bf16.msra.mxu0 %v3225_v17  ;;  %2652 = vmatpush3.bf16.msra.mxu1 %v3263_v42 }
 0x142   :  { %2623 = vmatprep.subr.bf16.mxu0 %v3228_v18  ;;  %2653 = vmatprep.subr.bf16.mxu1 %v3130_v50 }
 0x143   :  { %817 = vmatprep.mubr.f32.mxu0 %v3128_v1  ;;  %2274 = vmatprep.mubr.msk.f32.mxu1 %vm3131_vm4, %v3128_v1 }
 0x145   :  { %2625 = vmatpush1.bf16.msra.mxu0 %v3236_v24  ;;  %2655 = vmatpush3.bf16.msra.mxu1 %v3279_v53 }
 0x146   :  { %2627 = vmatprep.subr.bf16.mxu0 %v3239_v25  ;;  %2656 = vmatprep.subr.bf16.mxu1 %v3130_v50 }
 0x149   :  { %2629 = vmatpush1.bf16.msra.mxu0 %v3253_v33  ;;  %2658 = vmatpush3.bf16.msra.mxu1 %v3295_v63 }
 0x14a   :  { %2631 = vmatprep.subr.bf16.mxu0 %v3256_v35  ;;  %2659 = vmatprep.subr.bf16.mxu1 %v3130_v50 }
 0x14d   :  { %2633 = vmatpush1.bf16.msra.mxu0 %v3270_v44  ;;  %2661 = vmatpush3.bf16.msra.mxu1 %v3311_v10 }
 0x14e   :  { %2635 = vmatprep.subr.bf16.mxu0 %v3273_v47  ;;  %2662 = vmatprep.subr.bf16.mxu1 %v3130_v50 }
 0x151   :  { %2637 = vmatpush1.bf16.msra.mxu0 %v3286_v55  ;;  %2664 = vmatpush3.bf16.msra.mxu1 %v3327_v21 }
 0x152   :  { %2639 = vmatprep.subr.bf16.mxu0 %v3289_v58  ;;  %2665 = vmatprep.subr.bf16.mxu1 %v3130_v50 }
 0x155   :  { %2641 = vmatpush1.bf16.msra.mxu0 %v3302_v2  ;;  %2667 = vmatpush3.bf16.msra.mxu1 %v3341_v28 }
 0x156   :  { %2643 = vmatprep.subr.bf16.mxu0 %v3305_v5  ;;  %2668 = vmatprep.subr.bf16.mxu1 %v3130_v50 }
 0x159   :  { %2645 = vmatpush1.bf16.msra.mxu0 %v3318_v12  ;;  %2670 = vmatpush3.bf16.msra.mxu1 %v3351_v31 }
 0x15a   :  { %2647 = vmatprep.subr.bf16.mxu0 %v3321_v16  ;;  %2671 = vmatprep.subr.bf16.mxu1 %v3130_v50 }
 0x15d   :  { %2649 = vmatpush1.bf16.msra.mxu0 %v3334_v23  ;;  %2673 = vmatpush3.bf16.msra.mxu1 %v3360_v36 }
 0x15e   :  { %2675 = vmatprep.subr.bf16.mxu0 %v3221_v14  ;;  %2706 = vmatprep.subr.bf16.mxu1 %v3130_v50 }
 0x213   :  { %v651_v41 = vpop.f32.mrb[2].mxu0  ;;  %v736_v46 = vpop.f32.mrb[10].mxu1 }
 0x214   :  { %v2984_v60 = vadd.f32 %v651_v41, %v3409_v61  ;;  %v653_v0 = vpop.f32.mrb[3].mxu0  ;;  %v2241_v3 = vpop.f32.mrb[11].mxu1  ;;  %v737_v22 = vadd.f32 %v3424_v30, %v736_v46 }
 0x215   :  { %v2985_v8 = vadd.f32 %v653_v0, %v3413_v4 }
 0x216   :  { %v1972_v7 = vmul.f32 -1.442695, %v2984_v60 }
 0x217   :  { %v1973_v9 = vmul.f32 -1.442695, %v2985_v8 }
 0x218   :  { %3031 = vpow2.f32 %v1972_v7 }
 0x219   :  { %3033 = vpow2.f32 %v1973_v9 }
 0x222   :  { %v3032_v13 = vpop.eup %3031 }
 0x223   :  { %v664_v15 = vadd.f32 1.0, %v3032_v13  ;;  %v3034_v19 = vpop.eup %3033 }
 0x224   :  { %v665_v20 = vadd.f32 1.0, %v3034_v19 }
 0x225   :  { %3035 = vrcp.f32 %v664_v15 }
 0x226   :  { %3037 = vrcp.f32 %v665_v20 }
 0x22f   :  { %v3036_v26 = vpop.eup %3035 }
 0x230   :  { %v740_v27 = vmul.f32 %v3036_v26, %v737_v22  ;;  %v3038_v32 = vpop.eup %3037 }
 0x231   :  { %v743_v34 = vsub.f32 1.0, %v3038_v32  ;;  %v745_v39 = vmul.f32 %v3038_v32, %v578_v57 }
 0x232   :  { %v741_v29 = vadd.f32 %v740_v27, %v3401_v45 }
 0x234   :  { %3039 = vtanh.f32 %v741_v29 }
 0x23e   :  { %v3040_v37 = vpop.eup %3039 }
 0x23f   :  { %v744_v38 = vmul.f32 %v3040_v37, %v743_v34 }
 0x241   :  { %v746_v40 = vadd.f32 %v745_v39, %v744_v38 }
 0x243   :  { %818 = vmatmul.mubr.f32.vlgmr.msra.gmra.mrb[4].mxu0 %v746_v40  ;;  %2275 = vmatmul.mubr.f32.vlgmr.msra.gmra.mrb[12].mxu1 %v746_v40 }
 0x244   :  { %2677 = vmatpush1.bf16.msra.mxu0 %v3225_v17  ;;  %2708 = vmatpush3.bf16.msra.mxu1 %v3263_v42 }
 0x245   :  { %2679 = vmatprep.subr.bf16.mxu0 %v3228_v18  ;;  %2709 = vmatprep.subr.bf16.mxu1 %v3130_v50 }
 0x246   :  { %985 = vmatprep.mubr.f32.mxu0 %v3128_v1  ;;  %2309 = vmatprep.mubr.msk.f32.mxu1 %vm3131_vm4, %v3128_v1 }
 0x248   :  { %2681 = vmatpush1.bf16.msra.mxu0 %v3236_v24  ;;  %2711 = vmatpush3.bf16.msra.mxu1 %v3279_v53 }
 0x249   :  { %2683 = vmatprep.subr.bf16.mxu0 %v3239_v25  ;;  %2712 = vmatprep.subr.bf16.mxu1 %v3130_v50 }
 0x24c   :  { %2685 = vmatpush1.bf16.msra.mxu0 %v3253_v33  ;;  %2714 = vmatpush3.bf16.msra.mxu1 %v3295_v63 }
 0x24d   :  { %2687 = vmatprep.subr.bf16.mxu0 %v3256_v35  ;;  %2715 = vmatprep.subr.bf16.mxu1 %v3130_v50 }
 0x250   :  { %2689 = vmatpush1.bf16.msra.mxu0 %v3270_v44  ;;  %2717 = vmatpush3.bf16.msra.mxu1 %v3311_v10 }
 0x251   :  { %2691 = vmatprep.subr.bf16.mxu0 %v3273_v47  ;;  %2718 = vmatprep.subr.bf16.mxu1 %v3130_v50 }
 0x254   :  { %2693 = vmatpush1.bf16.msra.mxu0 %v3286_v55  ;;  %2720 = vmatpush3.bf16.msra.mxu1 %v3327_v21 }
 0x255   :  { %2695 = vmatprep.subr.bf16.mxu0 %v3289_v58  ;;  %2721 = vmatprep.subr.bf16.mxu1 %v3130_v50 }
 0x258   :  { %2697 = vmatpush1.bf16.msra.mxu0 %v3302_v2  ;;  %2723 = vmatpush3.bf16.msra.mxu1 %v3341_v28 }
 0x259   :  { %2699 = vmatprep.subr.bf16.mxu0 %v3305_v5  ;;  %2724 = vmatprep.subr.bf16.mxu1 %v3130_v50 }
 0x25c   :  { %2701 = vmatpush1.bf16.msra.mxu0 %v3318_v12  ;;  %2726 = vmatpush3.bf16.msra.mxu1 %v3351_v31 }
 0x25d   :  { %2703 = vmatprep.subr.bf16.mxu0 %v3321_v16  ;;  %2727 = vmatprep.subr.bf16.mxu1 %v3130_v50 }
 0x260   :  { %2705 = vmatpush1.bf16.msra.mxu0 %v3334_v23  ;;  %2729 = vmatpush3.bf16.msra.mxu1 %v3360_v36 }
 0x261   :  { %2731 = vmatprep.subr.bf16.mxu0 %v3221_v14  ;;  %2762 = vmatprep.subr.bf16.mxu1 %v3130_v50 }
 0x316   :  { %v819_v45 = vpop.f32.mrb[4].mxu0  ;;  %v904_v43 = vpop.f32.mrb[12].mxu1 }
 0x317   :  { %v2986_v48 = vadd.f32 %v819_v45, %v3409_v61  ;;  %v821_v51 = vpop.f32.mrb[5].mxu0  ;;  %v2276_v54 = vpop.f32.mrb[13].mxu1  ;;  %v905_v7 = vadd.f32 %v3424_v30, %v904_v43 }
 0x318   :  { %v2987_v57 = vadd.f32 %v821_v51, %v3413_v4 }
 0x319   :  { %v1974_v56 = vmul.f32 -1.442695, %v2986_v48 }
 0x31a   :  { %v1975_v41 = vmul.f32 -1.442695, %v2987_v57 }
 0x31b   :  { %3041 = vpow2.f32 %v1974_v56 }
 0x31c   :  { %3043 = vpow2.f32 %v1975_v41 }
 0x325   :  { %v3042_v46 = vpop.eup %3041 }
 0x326   :  { %v832_v60 = vadd.f32 1.0, %v3042_v46  ;;  %v3044_v0 = vpop.eup %3043 }
 0x327   :  { %v833_v3 = vadd.f32 1.0, %v3044_v0 }
 0x328   :  { %3045 = vrcp.f32 %v832_v60 }
 0x329   :  { %3047 = vrcp.f32 %v833_v3 }
 0x332   :  { %v3046_v8 = vpop.eup %3045 }
 0x333   :  { %v908_v9 = vmul.f32 %v3046_v8, %v905_v7  ;;  %v3048_v15 = vpop.eup %3047 }
 0x334   :  { %v911_v19 = vsub.f32 1.0, %v3048_v15  ;;  %v913_v26 = vmul.f32 %v3048_v15, %v746_v40 }
 0x335   :  { %v909_v13 = vadd.f32 %v908_v9, %v3405_v52 }
 0x337   :  { %3049 = vtanh.f32 %v909_v13 }
 0x341   :  { %v3050_v20 = vpop.eup %3049 }
 0x342   :  { %v912_v22 = vmul.f32 %v3050_v20, %v911_v19 }
 0x344   :  { %v914_v27 = vadd.f32 %v913_v26, %v912_v22 }
 0x346   :  { %986 = vmatmul.mubr.f32.vlgmr.msra.gmra.mrb[6].mxu0 %v914_v27  ;;  %2310 = vmatmul.mubr.f32.vlgmr.msra.gmra.mrb[14].mxu1 %v914_v27 }
 0x347   :  { %2733 = vmatpush1.bf16.msra.mxu0 %v3225_v17  ;;  %2764 = vmatpush3.bf16.msra.mxu1 %v3263_v42 }
 0x348   :  { %2735 = vmatprep.subr.bf16.mxu0 %v3228_v18  ;;  %2765 = vmatprep.subr.bf16.mxu1 %v3130_v50 }
 0x349   :  { %1153 = vmatprep.mubr.f32.mxu0 %v3128_v1  ;;  %2344 = vmatprep.mubr.msk.f32.mxu1 %vm3131_vm4, %v3128_v1 }
 0x34b   :  { %2737 = vmatpush1.bf16.msra.mxu0 %v3236_v24  ;;  %2767 = vmatpush3.bf16.msra.mxu1 %v3279_v53 }
 0x34c   :  { %2739 = vmatprep.subr.bf16.mxu0 %v3239_v25  ;;  %2768 = vmatprep.subr.bf16.mxu1 %v3130_v50 }
 0x34f   :  { %2741 = vmatpush1.bf16.msra.mxu0 %v3253_v33  ;;  %2770 = vmatpush3.bf16.msra.mxu1 %v3295_v63 }
 0x350   :  { %2743 = vmatprep.subr.bf16.mxu0 %v3256_v35  ;;  %2771 = vmatprep.subr.bf16.mxu1 %v3130_v50 }
 0x353   :  { %2745 = vmatpush1.bf16.msra.mxu0 %v3270_v44  ;;  %2773 = vmatpush3.bf16.msra.mxu1 %v3311_v10 }
 0x354   :  { %2747 = vmatprep.subr.bf16.mxu0 %v3273_v47  ;;  %2774 = vmatprep.subr.bf16.mxu1 %v3130_v50 }
 0x357   :  { %2749 = vmatpush1.bf16.msra.mxu0 %v3286_v55  ;;  %2776 = vmatpush3.bf16.msra.mxu1 %v3327_v21 }
 0x358   :  { %2751 = vmatprep.subr.bf16.mxu0 %v3289_v58  ;;  %2777 = vmatprep.subr.bf16.mxu1 %v3130_v50 }
 0x35b   :  { %2753 = vmatpush1.bf16.msra.mxu0 %v3302_v2  ;;  %2779 = vmatpush3.bf16.msra.mxu1 %v3341_v28 }
 0x35c   :  { %2755 = vmatprep.subr.bf16.mxu0 %v3305_v5  ;;  %2780 = vmatprep.subr.bf16.mxu1 %v3130_v50 }
 0x35f   :  { %2757 = vmatpush1.bf16.msra.mxu0 %v3318_v12  ;;  %2782 = vmatpush3.bf16.msra.mxu1 %v3351_v31 }
 0x360   :  { %2759 = vmatprep.subr.bf16.mxu0 %v3321_v16  ;;  %2783 = vmatprep.subr.bf16.mxu1 %v3130_v50 }
 0x363   :  { %2761 = vmatpush1.bf16.msra.mxu0 %v3334_v23  ;;  %2785 = vmatpush3.bf16.msra.mxu1 %v3360_v36 }
 0x364   :  { %2787 = vmatprep.subr.bf16.mxu0 %v3221_v14  ;;  %2818 = vmatprep.subr.bf16.mxu1 %v3130_v50 }
 0x419   :  { %v987_v52 = vpop.f32.mrb[6].mxu0  ;;  %v1072_v29 = vpop.f32.mrb[14].mxu1 }
 0x41a   :  { %v2988_v32 = vadd.f32 %v987_v52, %v3409_v61  ;;  %v989_v34 = vpop.f32.mrb[7].mxu0  ;;  %v2311_v37 = vpop.f32.mrb[15].mxu1  ;;  %v1073_v54 = vadd.f32 %v3424_v30, %v1072_v29 }
 0x41b   :  { %v2989_v39 = vadd.f32 %v989_v34, %v3413_v4 }
 0x41c   :  { %v1976_v38 = vmul.f32 -1.442695, %v2988_v32 }
 0x41d   :  { %v1977_v40 = vmul.f32 -1.442695, %v2989_v39 }
 0x41e   :  { %3051 = vpow2.f32 %v1976_v38 }
 0x41f   :  { %3053 = vpow2.f32 %v1977_v40 }
 0x428   :  { %v3052_v45 = vpop.eup %3051 }
 0x429   :  { %v1000_v43 = vadd.f32 1.0, %v3052_v45  ;;  %v3054_v48 = vpop.eup %3053 }
 0x42a   :  { %v1001_v51 = vadd.f32 1.0, %v3054_v48 }
 0x42b   :  { %3055 = vrcp.f32 %v1000_v43 }
 0x42c   :  { %3057 = vrcp.f32 %v1001_v51 }
 0x435   :  { %v3056_v56 = vpop.eup %3055 }
 0x436   :  { %v1076_v57 = vmul.f32 %v3056_v56, %v1073_v54  ;;  %v3058_v46 = vpop.eup %3057 }
 0x437   :  { %v1079_v60 = vsub.f32 1.0, %v3058_v46  ;;  %v1081_v7 = vmul.f32 %v3058_v46, %v914_v27 }
 0x438   :  { %v1077_v41 = vadd.f32 %v1076_v57, %v3403_v49 }
 0x43a   :  { %3059 = vtanh.f32 %v1077_v41 }
 0x444   :  { %v3060_v0 = vpop.eup %3059 }
 0x445   :  { %v1080_v3 = vmul.f32 %v3060_v0, %v1079_v60 }
 0x447   :  { %v1082_v8 = vadd.f32 %v1081_v7, %v1080_v3 }
 0x449   :  { %1154 = vmatmul.mubr.f32.vlgmr.msra.gmra.mrb[8].mxu0 %v1082_v8  ;;  %2345 = vmatmul.mubr.f32.vlgmr.msra.gmra.mrb[16].mxu1 %v1082_v8 }
 0x44a   :  { %2789 = vmatpush1.bf16.msra.mxu0 %v3225_v17  ;;  %2820 = vmatpush3.bf16.msra.mxu1 %v3263_v42 }
 0x44b   :  { %2791 = vmatprep.subr.bf16.mxu0 %v3228_v18  ;;  %2821 = vmatprep.subr.bf16.mxu1 %v3130_v50 }
 0x44c   :  { %1321 = vmatprep.mubr.f32.mxu0 %v3128_v1  ;;  %2379 = vmatprep.mubr.msk.f32.mxu1 %vm3131_vm4, %v3128_v1 }
 0x44e   :  { %2793 = vmatpush1.bf16.msra.mxu0 %v3236_v24  ;;  %2823 = vmatpush3.bf16.msra.mxu1 %v3279_v53 }
 0x44f   :  { %2795 = vmatprep.subr.bf16.mxu0 %v3239_v25  ;;  %2824 = vmatprep.subr.bf16.mxu1 %v3130_v50 }
 0x452   :  { %2797 = vmatpush1.bf16.msra.mxu0 %v3253_v33  ;;  %2826 = vmatpush3.bf16.msra.mxu1 %v3295_v63 }
 0x453   :  { %2799 = vmatprep.subr.bf16.mxu0 %v3256_v35  ;;  %2827 = vmatprep.subr.bf16.mxu1 %v3130_v50 }
 0x456   :  { %2801 = vmatpush1.bf16.msra.mxu0 %v3270_v44  ;;  %2829 = vmatpush3.bf16.msra.mxu1 %v3311_v10 }
 0x457   :  { %2803 = vmatprep.subr.bf16.mxu0 %v3273_v47  ;;  %2830 = vmatprep.subr.bf16.mxu1 %v3130_v50 }
 0x45a   :  { %2805 = vmatpush1.bf16.msra.mxu0 %v3286_v55  ;;  %2832 = vmatpush3.bf16.msra.mxu1 %v3327_v21 }
 0x45b   :  { %2807 = vmatprep.subr.bf16.mxu0 %v3289_v58  ;;  %2833 = vmatprep.subr.bf16.mxu1 %v3130_v50 }
 0x45e   :  { %2809 = vmatpush1.bf16.msra.mxu0 %v3302_v2  ;;  %2835 = vmatpush3.bf16.msra.mxu1 %v3341_v28 }
 0x45f   :  { %2811 = vmatprep.subr.bf16.mxu0 %v3305_v5  ;;  %2836 = vmatprep.subr.bf16.mxu1 %v3130_v50 }
 0x462   :  { %2813 = vmatpush1.bf16.msra.mxu0 %v3318_v12  ;;  %2838 = vmatpush3.bf16.msra.mxu1 %v3351_v31 }
 0x463   :  { %2815 = vmatprep.subr.bf16.mxu0 %v3321_v16  ;;  %2839 = vmatprep.subr.bf16.mxu1 %v3130_v50 }
 0x466   :  { %2817 = vmatpush1.bf16.msra.mxu0 %v3334_v23  ;;  %2841 = vmatpush3.bf16.msra.mxu1 %v3360_v36 }
 0x467   :  { %2843 = vmatprep.subr.bf16.mxu0 %v3221_v14  ;;  %2874 = vmatprep.subr.bf16.mxu1 %v3130_v50 }
 0x51c   :  { %v1155_v49 = vpop.f32.mrb[8].mxu0  ;;  %v1240_v9 = vpop.f32.mrb[16].mxu1 }
 0x51d   :  { %v2990_v13 = vadd.f32 %v1155_v49, %v3409_v61  ;;  %v1157_v15 = vpop.f32.mrb[9].mxu0  ;;  %v2346_v19 = vpop.f32.mrb[17].mxu1  ;;  %v1241_v34 = vadd.f32 %v3424_v30, %v1240_v9 }
 0x51e   :  { %v2991_v22 = vadd.f32 %v1157_v15, %v3413_v4 }
 0x51f   :  { %v1978_v20 = vmul.f32 -1.442695, %v2990_v13 }
 0x520   :  { %v1979_v26 = vmul.f32 -1.442695, %v2991_v22 }
 0x521   :  { %3061 = vpow2.f32 %v1978_v20 }
 0x522   :  { %3063 = vpow2.f32 %v1979_v26 }
 0x52b   :  { %v3062_v27 = vpop.eup %3061 }
 0x52c   :  { %v1168_v52 = vadd.f32 1.0, %v3062_v27  ;;  %v3064_v29 = vpop.eup %3063 }
 0x52d   :  { %v1169_v32 = vadd.f32 1.0, %v3064_v29 }
 0x52e   :  { %3065 = vrcp.f32 %v1168_v52 }
 0x52f   :  { %3067 = vrcp.f32 %v1169_v32  ;;  %v1757_v32 = vld [vmem:[%s3747_s5 + $0x10] sm:$0xff] }
 0x538   :  { %v3066_v37 = vpop.eup %3065 }
 0x539   :  { %v1244_v38 = vmul.f32 %v3066_v37, %v1241_v34  ;;  %v3068_v40 = vpop.eup %3067  ;;  %v1759_v37 = vld [vmem:[%s3747_s5 + $0x20] sm:$0xff] }
 0x53a   :  { %v1247_v45 = vsub.f32 1.0, %v3068_v40  ;;  %v1249_v51 = vmul.f32 %v3068_v40, %v1082_v8  ;;  %v1761_v40 = vld [vmem:[%s3747_s5 + $0x30] sm:$0xff] }
 0x53b   :  { %v1245_v39 = vadd.f32 %v1244_v38, %v3411_v62  ;;  %v1760_v38 = vld [vmem:[%s3747_s5 + $0x28] sm:$0xff] }
 0x53d   :  { %3069 = vtanh.f32 %v1245_v39  ;;  %v2961_v39 = vpack.c.bf16 %v1760_v38, %v1759_v37 }
 0x547   :  { %v3070_v43 = vpop.eup %3069 }
 0x548   :  { %v1248_v48 = vmul.f32 %v3070_v43, %v1247_v45  ;;  %v1762_v45 = vld [vmem:[%s3747_s5 + $0x38] sm:$0xff] }
 0x549   :  { %v2964_v43 = vpack.c.bf16 %v1762_v45, %v1761_v40 }
 0x54a   :  { %v1250_v54 = vadd.f32 %v1249_v51, %v1248_v48  ;;  %v1763_v48 = vld [vmem:[%s3747_s5 + $0x40] sm:$0xff]  ;;  %v1764_v51 = vld [vmem:[%s3747_s5 + $0x48] sm:$0xff] }
 0x54c   :  { %1322 = vmatmul.mubr.f32.vlgmr.msra.gmra.mrb[10].mxu0 %v1250_v54  ;;  %2380 = vmatmul.mubr.f32.vlgmr.msra.gmra.mrb[18].mxu1 %v1250_v54 }
 0x54d   :  { %2845 = vmatpush1.bf16.msra.mxu0 %v3225_v17  ;;  %2876 = vmatpush3.bf16.msra.mxu1 %v3263_v42 }
 0x54e   :  { %2847 = vmatprep.subr.bf16.mxu0 %v3228_v18  ;;  %2877 = vmatprep.subr.bf16.mxu1 %v3130_v50 }
 0x54f   :  { %1489 = vmatprep.mubr.f32.mxu0 %v3128_v1  ;;  %2414 = vmatprep.mubr.msk.f32.mxu1 %vm3131_vm4, %v3128_v1 }
 0x551   :  { %2849 = vmatpush1.bf16.msra.mxu0 %v3236_v24  ;;  %2879 = vmatpush3.bf16.msra.mxu1 %v3279_v53 }
 0x552   :  { %2851 = vmatprep.subr.bf16.mxu0 %v3239_v25  ;;  %2880 = vmatprep.subr.bf16.mxu1 %v3130_v50 }
 0x555   :  { %2853 = vmatpush1.bf16.msra.mxu0 %v3253_v33  ;;  %2882 = vmatpush3.bf16.msra.mxu1 %v3295_v63 }
 0x556   :  { %2855 = vmatprep.subr.bf16.mxu0 %v3256_v35  ;;  %2883 = vmatprep.subr.bf16.mxu1 %v3130_v50 }
 0x559   :  { %2857 = vmatpush1.bf16.msra.mxu0 %v3270_v44  ;;  %2885 = vmatpush3.bf16.msra.mxu1 %v3311_v10 }
 0x55a   :  { %2859 = vmatprep.subr.bf16.mxu0 %v3273_v47  ;;  %2886 = vmatprep.subr.bf16.mxu1 %v3130_v50 }
 0x55d   :  { %2861 = vmatpush1.bf16.msra.mxu0 %v3286_v55  ;;  %2888 = vmatpush3.bf16.msra.mxu1 %v3327_v21 }
 0x55e   :  { %2863 = vmatprep.subr.bf16.mxu0 %v3289_v58  ;;  %2889 = vmatprep.subr.bf16.mxu1 %v3130_v50 }
 0x561   :  { %2865 = vmatpush1.bf16.msra.mxu0 %v3302_v2  ;;  %2891 = vmatpush3.bf16.msra.mxu1 %v3341_v28 }
 0x562   :  { %2867 = vmatprep.subr.bf16.mxu0 %v3305_v5  ;;  %2892 = vmatprep.subr.bf16.mxu1 %v3130_v50 }
 0x565   :  { %2869 = vmatpush1.bf16.msra.mxu0 %v3318_v12  ;;  %2894 = vmatpush3.bf16.msra.mxu1 %v3351_v31 }
 0x566   :  { %2871 = vmatprep.subr.bf16.mxu0 %v3321_v16  ;;  %2895 = vmatprep.subr.bf16.mxu1 %v3130_v50 }
 0x569   :  { %2873 = vmatpush1.bf16.msra.mxu0 %v3334_v23  ;;  %2897 = vmatpush3.bf16.msra.mxu1 %v3360_v36 }
 0x56a   :  { %2899 = vmatprep.subr.bf16.mxu0 %v3221_v14  ;;  %2930 = vmatprep.subr.bf16.mxu1 %v3130_v50 }
 0x61f   :  { %v1323_v62 = vpop.f32.mrb[10].mxu0  ;;  %v1408_v56 = vpop.f32.mrb[18].mxu1 }
 0x620   :  { %v2992_v57 = vadd.f32 %v1323_v62, %v3409_v61  ;;  %v1325_v41 = vpop.f32.mrb[11].mxu0  ;;  %v2381_v46 = vpop.f32.mrb[19].mxu1  ;;  %v1409_v14 = vadd.f32 %v3424_v30, %v1408_v56  ;;  %v1765_v62 = vld [vmem:[%s3747_s5 + $0x50] sm:$0xff]  ;;  %v1766_v56 = vld [vmem:[%s3747_s5 + $0x58] sm:$0xff] }
 0x621   :  { %v2993_v0 = vadd.f32 %v1325_v41, %v3413_v4  ;;  %v1767_v41 = vld [vmem:[%s3747_s5 + $0x60] sm:$0xff]  ;;  %v1768_v46 = vld [vmem:[%s3747_s5 + $0x68] sm:$0xff] }
 0x622   :  { %v1980_v60 = vmul.f32 -1.442695, %v2992_v57  ;;  %v2970_v57 = vpack.c.bf16 %v1766_v56, %v1765_v62 }
 0x623   :  { %v1981_v3 = vmul.f32 -1.442695, %v2993_v0  ;;  %v1769_v0 = vld [vmem:[%s3747_s5 + $0x70] sm:$0xff] }
 0x624   :  { %3071 = vpow2.f32 %v1980_v60  ;;  %v2973_v60 = vpack.c.bf16 %v1768_v46, %v1767_v41 }
 0x625   :  { %3073 = vpow2.f32 %v1981_v3  ;;  %v1770_v3 = vld [vmem:[%s3747_s5 + $0x78] sm:$0xff] }
 0x62e   :  { %v3072_v7 = vpop.eup %3071 }
 0x62f   :  { %v1336_v8 = vadd.f32 1.0, %v3072_v7  ;;  %v3074_v49 = vpop.eup %3073  ;;  %v2976_v7 = vpack.c.bf16 %v1770_v3, %v1769_v0 }
 0x630   :  { %v1337_v9 = vadd.f32 1.0, %v3074_v49 }
 0x631   :  { %3075 = vrcp.f32 %v1336_v8 }
 0x632   :  { %3077 = vrcp.f32 %v1337_v9 }
 0x63b   :  { %v3076_v13 = vpop.eup %3075 }
 0x63c   :  { %v1412_v15 = vmul.f32 %v3076_v13, %v1409_v14  ;;  %v3078_v20 = vpop.eup %3077 }
 0x63d   :  { %v1415_v22 = vsub.f32 1.0, %v3078_v20  ;;  %v1417_v52 = vmul.f32 %v3078_v20, %v1250_v54  ;;  %v2967_v54 = vpack.c.bf16 %v1764_v51, %v1763_v48 }
 0x63e   :  { %v1413_v19 = vadd.f32 %v1412_v15, %v3407_v59  ;;  %v1756_v59 = vld [vmem:[%s3747_s5 + $0x8] sm:$0xff] }
 0x640   :  { %3079 = vtanh.f32 %v1413_v19 }
 0x64a   :  { %v3080_v26 = vpop.eup %3079 }
 0x64b   :  { %v1416_v27 = vmul.f32 %v3080_v26, %v1415_v22 }
 0x64d   :  { %v1418_v29 = vadd.f32 %v1417_v52, %v1416_v27 }
 0x64f   :  { %1490 = vmatmul.mubr.f32.vlgmr.msra.gmra.mrb[12].mxu0 %v1418_v29  ;;  %2415 = vmatmul.mubr.f32.vlgmr.msra.gmra.mrb[20].mxu1 %v1418_v29 }
 0x650   :  { %2901 = vmatpush1.bf16.msra.mxu0 %v3225_v17  ;;  %2932 = vmatpush3.bf16.msra.mxu1 %v3263_v42 }
 0x651   :  { %2903 = vmatprep.subr.bf16.mxu0 %v3228_v18  ;;  %2933 = vmatprep.subr.bf16.mxu1 %v3130_v50 }
 0x652   :  { %1657 = vmatprep.mubr.f32.mxu0 %v3128_v1  ;;  %2449 = vmatprep.mubr.msk.f32.mxu1 %vm3131_vm4, %v3128_v1 }
 0x654   :  { %2905 = vmatpush1.bf16.msra.mxu0 %v3236_v24  ;;  %2935 = vmatpush3.bf16.msra.mxu1 %v3279_v53 }
 0x655   :  { %2907 = vmatprep.subr.bf16.mxu0 %v3239_v25  ;;  %2936 = vmatprep.subr.bf16.mxu1 %v3130_v50 }
 0x658   :  { %2909 = vmatpush1.bf16.msra.mxu0 %v3253_v33  ;;  %2938 = vmatpush3.bf16.msra.mxu1 %v3295_v63 }
 0x659   :  { %2911 = vmatprep.subr.bf16.mxu0 %v3256_v35  ;;  %2939 = vmatprep.subr.bf16.mxu1 %v3130_v50 }
 0x65c   :  { %2913 = vmatpush1.bf16.msra.mxu0 %v3270_v44  ;;  %2941 = vmatpush3.bf16.msra.mxu1 %v3311_v10 }
 0x65d   :  { %2915 = vmatprep.subr.bf16.mxu0 %v3273_v47  ;;  %2942 = vmatprep.subr.bf16.mxu1 %v3130_v50 }
 0x660   :  { %2917 = vmatpush1.bf16.msra.mxu0 %v3286_v55  ;;  %2944 = vmatpush3.bf16.msra.mxu1 %v3327_v21 }
 0x661   :  { %2919 = vmatprep.subr.bf16.mxu0 %v3289_v58  ;;  %2945 = vmatprep.subr.bf16.mxu1 %v3130_v50 }
 0x664   :  { %2921 = vmatpush1.bf16.msra.mxu0 %v3302_v2  ;;  %2947 = vmatpush3.bf16.msra.mxu1 %v3341_v28 }
 0x665   :  { %2923 = vmatprep.subr.bf16.mxu0 %v3305_v5  ;;  %2948 = vmatprep.subr.bf16.mxu1 %v3130_v50 }
 0x668   :  { %2925 = vmatpush1.bf16.msra.mxu0 %v3318_v12  ;;  %2950 = vmatpush3.bf16.msra.mxu1 %v3351_v31 }
 0x669   :  { %2927 = vmatprep.subr.bf16.mxu0 %v3321_v16  ;;  %2951 = vmatprep.subr.bf16.mxu1 %v3130_v50 }
 0x66c   :  { %2929 = vmatpush1.bf16.msra.mxu0 %v3334_v23  ;;  %2953 = vmatpush3.bf16.msra.mxu1 %v3360_v36  ;;  %v1755_v36 = vld [vmem:[%s3747_s5] sm:$0xff] }
 0x66d   :  { %2954 = vmatprep.subr.bf16.mxu0 %v3130_v50  ;;  %2978 = vmatprep.subr.bf16.mxu1 %v3130_v50 }
 0x722   :  { %v1491_v17 = vpop.f32.mrb[12].mxu0  ;;  %v1576_v18 = vpop.f32.mrb[20].mxu1 }
 0x723   :  { %v2994_v24 = vadd.f32 %v1491_v17, %v3409_v61  ;;  %v1493_v25 = vpop.f32.mrb[13].mxu0  ;;  %v2416_v33 = vpop.f32.mrb[21].mxu1  ;;  %v1577_v63 = vadd.f32 %v3424_v30, %v1576_v18 }
 0x724   :  { %v2995_v42 = vadd.f32 %v1493_v25, %v3413_v4 }
 0x725   :  { %v1982_v35 = vmul.f32 -1.442695, %v2994_v24 }
 0x726   :  { %v1983_v44 = vmul.f32 -1.442695, %v2995_v42 }
 0x727   :  { %3081 = vpow2.f32 %v1982_v35 }
 0x728   :  { %3083 = vpow2.f32 %v1983_v44  ;;  %v1986_v44 = vld [vmem:[%s3748_s6] ss:$0 sm:$0xff] }
 0x731   :  { %v3082_v47 = vpop.eup %3081 }
 0x732   :  { %v1504_v53 = vadd.f32 1.0, %v3082_v47  ;;  %v3084_v55 = vpop.eup %3083 }
 0x733   :  { %v1505_v58 = vadd.f32 1.0, %v3084_v55 }
 0x734   :  { %3085 = vrcp.f32 %v1504_v53 }
 0x735   :  { %3087 = vrcp.f32 %v1505_v58 }
 0x73e   :  { %v3086_v2 = vpop.eup %3085 }
 0x73f   :  { %v1580_v5 = vmul.f32 %v3086_v2, %v1577_v63  ;;  %v3088_v12 = vpop.eup %3087  ;;  %v1987_v63 = vld [vmem:[#allocation3] ss:$0 sm:$0xff] }
 0x740   :  { %v1583_v16 = vsub.f32 1.0, %v3088_v12  ;;  %v1585_v28 = vmul.f32 %v3088_v12, %v1418_v29 }
 0x741   :  { %v1581_v10 = vadd.f32 %v1580_v5, %v3418_v11  ;;  %v2955_v11 = vpack.c.bf16 %v1756_v59, %v1755_v36 }
 0x743   :  { %3089 = vtanh.f32 %v1581_v10 }
 0x74d   :  { %v3090_v21 = vpop.eup %3089 }
 0x74e   :  { %v1584_v23 = vmul.f32 %v3090_v21, %v1583_v16 }
 0x750   :  { %v3661_v31 = vadd.f32 %v1585_v28, %v1584_v23 }
 0x752   :  { %1658 = vmatmul.mubr.f32.vlgmr.msra.gmra.mrb[14].mxu0 %v3661_v31  ;;  %2450 = vmatmul.mubr.f32.vlgmr.msra.gmra.mrb[22].mxu1 %v3661_v31 }
 0x753   :  { %2484 = vmatprep.mubr.msk.f32.mxu0 %vm3131_vm4, %v3128_v1  ;;  %2491 = vmatprep.mubr.msk.f32.mxu1 %vm3131_vm4, %v3128_v1  ;;  %v1758_v1 = vld [vmem:[%s3747_s5 + $0x18] sm:$0xff] }
 0x754   :  { %2956 = vmatpush3.bf16.msra.mxu0 %v2955_v11  ;;  %v2958_v34 = vpack.c.bf16 %v1758_v1, %v1757_v32 }
 0x755   :  { %2957 = vmatprep.subr.bf16.mxu0 %v3130_v50 }
 0x758   :  { %2959 = vmatpush3.bf16.msra.mxu0 %v2958_v34 }
 0x759   :  { %2960 = vmatprep.subr.bf16.mxu0 %v3130_v50 }
 0x75c   :  { %2962 = vmatpush3.bf16.msra.mxu0 %v2961_v39 }
 0x75d   :  { %2963 = vmatprep.subr.bf16.mxu0 %v3130_v50 }
 0x760   :  { %2965 = vmatpush3.bf16.msra.mxu0 %v2964_v43 }
 0x761   :  { %2966 = vmatprep.subr.bf16.mxu0 %v3130_v50 }
 0x764   :  { %2968 = vmatpush3.bf16.msra.mxu0 %v2967_v54 }
 0x765   :  { %2969 = vmatprep.subr.bf16.mxu0 %v3130_v50 }
 0x768   :  { %2971 = vmatpush3.bf16.msra.mxu0 %v2970_v57 }
 0x769   :  { %2972 = vmatprep.subr.bf16.mxu0 %v3130_v50 }
 0x76c   :  { %2974 = vmatpush3.bf16.msra.mxu0 %v2973_v60 }
 0x76d   :  { %2975 = vmatprep.subr.bf16.mxu0 %v3130_v50 }
 0x770   :  { %2977 = vmatpush3.bf16.msra.mxu0 %v2976_v7 }
 0x825   :  { %v1659_v8 = vpop.f32.mrb[14].mxu0  ;;  %v1744_v49 = vpop.f32.mrb[22].mxu1 }
 0x826   :  { %v2996_v9 = vadd.f32 %v1659_v8, %v3409_v61  ;;  %v1661_v14 = vpop.f32.mrb[15].mxu0  ;;  %v2451_v13 = vpop.f32.mrb[23].mxu1  ;;  %v1745_v50 = vadd.f32 %v3424_v30, %v1744_v49  ;;  %v1849_v30 = vld [vmem:[%s3749_s7] sm:$0xff] }
 0x827   :  { %v2997_v19 = vadd.f32 %v1661_v14, %v3413_v4 }
 0x828   :  { %v1984_v15 = vmul.f32 -1.442695, %v2996_v9 }
 0x829   :  { %v1985_v20 = vmul.f32 -1.442695, %v2997_v19 }
 0x82a   :  { %3091 = vpow2.f32 %v1984_v15 }
 0x82b   :  { %3093 = vpow2.f32 %v1985_v20 }
 0x834   :  { %v3092_v22 = vpop.eup %3091 }
 0x835   :  { %v1672_v26 = vadd.f32 1.0, %v3092_v22  ;;  %v3094_v27 = vpop.eup %3093 }
 0x836   :  { %v1673_v52 = vadd.f32 1.0, %v3094_v27 }
 0x837   :  { %3095 = vrcp.f32 %v1672_v26 }
 0x838   :  { %3097 = vrcp.f32 %v1673_v52 }
 0x841   :  { %v3096_v29 = vpop.eup %3095 }
 0x842   :  { %v1748_v17 = vmul.f32 %v3096_v29, %v1745_v50  ;;  %v3098_v18 = vpop.eup %3097 }
 0x843   :  { %v1751_v24 = vsub.f32 1.0, %v3098_v18  ;;  %v1753_v33 = vmul.f32 %v3098_v18, %v3661_v31 }
 0x844   :  { %v1749_v61 = vadd.f32 %v1748_v17, %v3415_v6  ;;  %v1850_v6 = vld [vmem:[%s3749_s7 + $0x8] sm:$0x3] }
 0x845   :  { %v2979_v42 = vpack.c.bf16 %v1850_v6, %v1849_v30 }
 0x846   :  { %3099 = vtanh.f32 %v1749_v61 }
 0x847   :  { %2981 = vmatpush3.bf16.msk.msra.mxu1 %vm2980_vm6, %v2979_v42 }
 0x850   :  { %v3100_v25 = vpop.eup %3099 }
 0x851   :  { %v1752_v4 = vmul.f32 %v3100_v25, %v1751_v24 }
 0x853   :  { %v1754_v35 = vadd.f32 %v1753_v33, %v1752_v4 }
 0x855   :  { %2485 = vmatmul.mubr.f32.vlgmr.msra.gmra.mrb[16].mxu0 %v1754_v35 }
 0x928   :  { %v1844_v47 = vpop.f32.mrb[16].mxu0 }
 0x929   :  { %v1845_v53 = vadd.f32 %v1986_v44, %v1844_v47  ;;  %v2486_v55 = vpop.f32.mrb[17].mxu0 }
 0x92b   :  { %v1848_v58 = vmax.f32 %v1845_v53, 0.0 }
 0x92d   :  { %2492 = vmatmul.mubr.msk.f32.vlgmr.msra.gmra.mrb[24].mxu1 %vm1858_vm7, %v1848_v58 }
 0xa00   :  { %v1932_v2 = vpop.f32.mrb[24].mxu1 }
 0xa01   :  { %v1933_v5 = vadd.f32 %v1987_v63, %v1932_v2  ;;  %v2493_v10 = vpop.f32.mrb[25].mxu1 }
 0xa03   :  { %1937 = vst.msk [vmem:[%s3751_s9] sm:$0xff] %vm1936_vm8, %v1933_v5 }
 0xa04   :  { %1942 = vsyncpa [#allocation5], 1 }

</bundles_post_ra>
